<compile_context>
chip_gen: v7x
topology: tpu7x:2x2x1
jax: 0.10.0
libtpu: 0.0.40
codegen_flags: <defaults>
</compile_context>

<pallas_src>
import functools

import numpy as np
import jax
import jax.numpy as jnp
from jax import lax
from jax.experimental import pallas as pl
from jax.experimental.pallas import tpu as pltpu


# ------------------------------ fused kernel -------------------------------

def _master_kernel(x_ref, pool_ref,
                   w1_ref, b1_ref, w2_ref, b2_ref, w3_ref, b3_ref, w4_ref, b4_ref,
                   wih_ref, whh_ref, blstm_ref,
                   wq1_ref, bq1_ref, wq2_ref, bq2_ref, wq3_ref, bq3_ref,
                   o_ref, *, T, B):
    def dense(x, w_ref, b_ref, relu=True):
        y = jnp.dot(x, w_ref[...], preferred_element_type=jnp.float32) + b_ref[...]
        return jnp.maximum(y, 0.0) if relu else y

    # ---- encoder: 4 conv layers as block-diagonal matmuls (all in VMEM) ----
    # x_ref rows = (t, b, block) ; columns = 256 Morton-ordered pixels / block
    y = dense(x_ref[...], w1_ref, b1_ref)     # (T*B*K, 512)
    y = dense(y, w2_ref, b2_ref)              # (T*B*K, 128)
    y = dense(y, w3_ref, b3_ref)              # (T*B*K, 32)
    y = dense(y, w4_ref, b4_ref)              # (T*B*K, 8)
    # adaptive_avg_pool2d((1,1)) == mean over the K = (H/16)*(W/16) blocks
    feats = jnp.dot(pool_ref[...], y, preferred_element_type=jnp.float32)  # (T*B, 8)

    # ---- LSTMCell(8, 8), T steps; gates packed [i, f, g, o] along columns ----
    H = whh_ref.shape[0]
    # hoisted input projection for all time steps (single matmul)
    xproj = jnp.dot(feats, wih_ref[...],
                    preferred_element_type=jnp.float32) + blstm_ref[...]   # (T*B, 4H)
    h = jnp.zeros((B, H), jnp.float32)
    c = jnp.zeros((B, H), jnp.float32)
    for t in range(T):                         # T static & small -> unrolled
        g = xproj[t * B:(t + 1) * B, :] + jnp.dot(
            h, whh_ref[...], preferred_element_type=jnp.float32)
        i = jax.nn.sigmoid(g[:, 0:H])
        f = jax.nn.sigmoid(g[:, H:2 * H])
        gg = jnp.tanh(g[:, 2 * H:3 * H])
        o = jax.nn.sigmoid(g[:, 3 * H:4 * H])
        c = f * c + i * gg
        h = o * jnp.tanh(c)

    # ---- Q MLP: 8 -> 64 -> 32 -> num_subpolicy ----
    q = dense(h, wq1_ref, bq1_ref)
    q = dense(q, wq2_ref, bq2_ref)
    q = dense(q, wq3_ref, bq3_ref, relu=False)
    o_ref[...] = q.astype(o_ref.dtype)


# ------------------------------ model wrapper -------------------------------

def master_forward(obs, packed):
    """obs: (B, T=4, H, W) f32 -> Q values (B, num_subpolicy)."""
    B, T, H, W = obs.shape
    assert H % 16 == 0 and W % 16 == 0, "4x stride-2 k=2 convs need H, W % 16 == 0"
    Hb, Wb = H // 16, W // 16
    K = Hb * Wb

    # One-time input re-layout (single XLA op): 16x16 blocks, pixels in Morton
    # order (h-bit above w-bit at each level), rows ordered (t, b, block) so
    # LSTM time steps are contiguous row slices inside the kernel.
    x = obs.transpose(1, 0, 2, 3)                                 # (T, B, H, W)
    x = x.reshape(T * B, Hb, 2, 2, 2, 2, Wb, 2, 2, 2, 2)
    x = x.transpose(0, 1, 6, 2, 7, 3, 8, 4, 9, 5, 10)             # interleave h/w bits
    x = x.reshape(T * B * K, 256)

    # block-average pooling matrix (identity when K == 1)
    pool = jnp.kron(jnp.eye(T * B, dtype=jnp.float32),
                    jnp.full((1, K), 1.0 / K, jnp.float32))       # (T*B, T*B*K)

    nsub = packed["wq3"].shape[1]
    args = (x, pool,
            packed["w1"], packed["b1"], packed["w2"], packed["b2"],
            packed["w3"], packed["b3"], packed["w4"], packed["b4"],
            packed["wih"], packed["whh"], packed["blstm"],
            packed["wq1"], packed["bq1"], packed["wq2"], packed["bq2"],
            packed["wq3"], packed["bq3"])
    vmem = pl.BlockSpec(memory_space=pltpu.MemorySpace.VMEM)
    return pl.pallas_call(
        functools.partial(_master_kernel, T=T, B=B),
        out_shape=jax.ShapeDtypeStruct((B, nsub), jnp.float32),
        in_specs=[vmem] * len(args),
        out_specs=vmem,
    )(*args)


# --------------------------- one-time weight packing -------------------------

def _block_diag(block, n):
    r, c = block.shape
    out = jnp.zeros((r * n, c * n), block.dtype)
    for i in range(n):
        out = out.at[i * r:(i + 1) * r, i * c:(i + 1) * c].set(block)
    return out


def pack_params(params):
    """Repack raw (PyTorch-layout) params into kernel layouts (done once)."""
    (w1, b1), (w2, b2), (w3, b3), (w4, b4) = params["convs"]

    # layer 1 (C=1): patch columns are (kh, kw) row-major
    w1p = w1.reshape(w1.shape[0], -1).T                              # (4, F)

    # layers 2-4: patch columns are (kh, kw)-major, channel-minor
    def pk(w):
        return w.transpose(0, 2, 3, 1).reshape(w.shape[0], -1).T     # (4*C, F)

    packed = {
        "w1": _block_diag(w1p, 64),    "b1": jnp.tile(b1.reshape(1, -1), (1, 64)),
        "w2": _block_diag(pk(w2), 16), "b2": jnp.tile(b2.reshape(1, -1), (1, 16)),
        "w3": _block_diag(pk(w3), 4),  "b3": jnp.tile(b3.reshape(1, -1), (1, 4)),
        "w4": pk(w4),                  "b4": b4.reshape(1, -1),
        # LSTM: gates [i, f, g, o] packed along columns, bias = b_ih + b_hh folded
        "wih": jnp.concatenate([params["lstm_wih"][k] for k in range(4)], axis=1),
        "whh": jnp.concatenate([params["lstm_whh"][k] for k in range(4)], axis=1),
        "blstm": jnp.concatenate([params["lstm_b"][k] for k in range(4)], axis=1),
    }
    for idx, name in enumerate(["q1", "q2", "q3"]):
        w, b = params["q"][idx]
        packed["w" + name] = w
        packed["b" + name] = b
    return packed


# ------------------------- deterministic parameters -------------------------

def init_params(key, num_subpolicy, num_filters=8, feat_dim=8, lstm_hidden=8):
    keys = iter(jax.random.split(key, 32))

    def uni(shape, fan_in):
        s = 1.0 / np.sqrt(fan_in)
        return jax.random.uniform(next(keys), shape, jnp.float32, -s, s)

    convs = []
    cin = 1
    for _ in range(4):
        w = uni((num_filters, cin, 2, 2), cin * 4)
        b = uni((num_filters,), cin * 4)
        convs.append((w, b))
        cin = num_filters

    # LSTMCell(8, 8): gates ordered [i, f, g, o]; bias = b_ih + b_hh folded
    wih = uni((4, feat_dim, lstm_hidden), lstm_hidden)
    whh = uni((4, lstm_hidden, lstm_hidden), lstm_hidden)
    bb = uni((4, 1, lstm_hidden), lstm_hidden)

    q_dims = [(feat_dim, 64), (64, 32), (32, num_subpolicy)]
    q = [(uni((din, dout), din), uni((1, dout), din)) for din, dout in q_dims]

    return {"convs": convs, "lstm_wih": wih, "lstm_whh": whh, "lstm_b": bb, "q": q}


# ------------------------- pure-JAX reference check -------------------------

def ref_forward(obs, params):
    def ref_encoder(o):
        x = o[:, None]
        for (w, b) in params["convs"]:
            x = lax.conv_general_dilated(
                x, w, window_strides=(2, 2), padding="VALID",
                dimension_numbers=("NCHW", "OIHW", "NCHW"))
            x = jnp.maximum(x + b[None, :, None, None], 0.0)
        return jnp.mean(x, axis=(2, 3))

    B, T = obs.shape[0], obs.shape[1]
    feats = [ref_encoder(obs[:, t]) for t in range(T)]
    wih, whh, bb = params["lstm_wih"], params["lstm_whh"], params["lstm_b"]
    h = jnp.zeros((B, 8), jnp.float32)
    c = jnp.zeros((B, 8), jnp.float32)
    for x in feats:
        g = [x @ wih[k] + h @ whh[k] + bb[k] for k in range(4)]
        i, f = jax.nn.sigmoid(g[0]), jax.nn.sigmoid(g[1])
        gg, o = jnp.tanh(g[2]), jax.nn.sigmoid(g[3])
        c = f * c + i * gg
        h = o * jnp.tanh(c)
    q = h
    for idx, (w, b) in enumerate(params["q"]):
        q = q @ w + b
        if idx < 2:
            q = jnp.maximum(q, 0.0)
    return q


# ---------------------------------- main ------------------------------------

if __name__ == "__main__":
    B, T, H, W = 2, 4, 16, 16          # obs_shape implies 4 stacked frames
    NUM_SUBPOLICY = 4

    key = jax.random.PRNGKey(0)
    k_obs, k_par = jax.random.split(key)
    obs = jax.random.normal(k_obs, (B, T, H, W), jnp.float32)
    params = init_params(k_par, NUM_SUBPOLICY)
    packed = pack_params(params)       # one-time repack into kernel layouts

    fwd = jax.jit(master_forward)
    q = jax.block_until_ready(fwd(obs, packed))

    q_ref = jax.block_until_ready(ref_forward(obs, params))
    assert q.shape == (B, NUM_SUBPOLICY)
    np.testing.assert_allclose(np.asarray(q), np.asarray(q_ref), atol=2e-3, rtol=2e-3)

    print("KERNEL_OK")
</pallas_src>

<mosaic_0001>
module attributes {stable_mosaic.version = 11 : i64} {
  func.func @_master_kernel(%arg0: memref<8x256xf32, #tpu.memory_space<vmem>>, %arg1: memref<8x8xf32, #tpu.memory_space<vmem>>, %arg2: memref<256x512xf32, #tpu.memory_space<vmem>>, %arg3: memref<1x512xf32, #tpu.memory_space<vmem>>, %arg4: memref<512x128xf32, #tpu.memory_space<vmem>>, %arg5: memref<1x128xf32, #tpu.memory_space<vmem>>, %arg6: memref<128x32xf32, #tpu.memory_space<vmem>>, %arg7: memref<1x32xf32, #tpu.memory_space<vmem>>, %arg8: memref<32x8xf32, #tpu.memory_space<vmem>>, %arg9: memref<1x8xf32, #tpu.memory_space<vmem>>, %arg10: memref<8x32xf32, #tpu.memory_space<vmem>>, %arg11: memref<8x32xf32, #tpu.memory_space<vmem>>, %arg12: memref<1x32xf32, #tpu.memory_space<vmem>>, %arg13: memref<8x64xf32, #tpu.memory_space<vmem>>, %arg14: memref<1x64xf32, #tpu.memory_space<vmem>>, %arg15: memref<64x32xf32, #tpu.memory_space<vmem>>, %arg16: memref<1x32xf32, #tpu.memory_space<vmem>>, %arg17: memref<32x4xf32, #tpu.memory_space<vmem>>, %arg18: memref<1x4xf32, #tpu.memory_space<vmem>>, %arg19: memref<2x4xf32, #tpu.memory_space<vmem>>) attributes {dimension_semantics = [], scalar_prefetch = 0 : i64, scratch_operands = 0 : i64, tpu.core_type = #tpu.core_type<tc>} {
    %c0 = arith.constant 0 : index
    %c0_0 = arith.constant 0 : index
    %0 = vector.load %arg0[%c0, %c0_0] : memref<8x256xf32, #tpu.memory_space<vmem>>, vector<8x256xf32>
    %c0_1 = arith.constant 0 : index
    %c0_2 = arith.constant 0 : index
    %1 = vector.load %arg2[%c0_1, %c0_2] : memref<256x512xf32, #tpu.memory_space<vmem>>, vector<256x512xf32>
    %cst = arith.constant dense<0.000000e+00> : vector<8x512xf32>
    %2 = tpu.matmul %0, %1, %cst {dimension_numbers = #tpu.dot_dimension_numbers<[1], [0], [0], [1], [0, 0, 1, 1], [], []>} : vector<8x256xf32>, vector<256x512xf32>, vector<8x512xf32> -> vector<8x512xf32>
    %c0_3 = arith.constant 0 : index
    %c0_4 = arith.constant 0 : index
    %3 = vector.load %arg3[%c0_3, %c0_4] : memref<1x512xf32, #tpu.memory_space<vmem>>, vector<1x512xf32>
    %4 = vector.broadcast %3 : vector<1x512xf32> to vector<8x512xf32>
    %5 = arith.addf %2, %4 : vector<8x512xf32>
    %cst_5 = arith.constant 0.000000e+00 : f32
    %6 = vector.broadcast %cst_5 : f32 to vector<8x512xf32>
    %7 = arith.maximumf %5, %6 : vector<8x512xf32>
    %c0_6 = arith.constant 0 : index
    %c0_7 = arith.constant 0 : index
    %8 = vector.load %arg4[%c0_6, %c0_7] : memref<512x128xf32, #tpu.memory_space<vmem>>, vector<512x128xf32>
    %cst_8 = arith.constant dense<0.000000e+00> : vector<8x128xf32>
    %9 = tpu.matmul %7, %8, %cst_8 {dimension_numbers = #tpu.dot_dimension_numbers<[1], [0], [0], [1], [0, 0, 1, 1], [], []>} : vector<8x512xf32>, vector<512x128xf32>, vector<8x128xf32> -> vector<8x128xf32>
    %c0_9 = arith.constant 0 : index
    %c0_10 = arith.constant 0 : index
    %10 = vector.load %arg5[%c0_9, %c0_10] : memref<1x128xf32, #tpu.memory_space<vmem>>, vector<1x128xf32>
    %11 = vector.broadcast %10 : vector<1x128xf32> to vector<8x128xf32>
    %12 = arith.addf %9, %11 : vector<8x128xf32>
    %cst_11 = arith.constant 0.000000e+00 : f32
    %13 = vector.broadcast %cst_11 : f32 to vector<8x128xf32>
    %14 = arith.maximumf %12, %13 : vector<8x128xf32>
    %c0_12 = arith.constant 0 : index
    %c0_13 = arith.constant 0 : index
    %15 = vector.load %arg6[%c0_12, %c0_13] : memref<128x32xf32, #tpu.memory_space<vmem>>, vector<128x32xf32>
    %cst_14 = arith.constant dense<0.000000e+00> : vector<8x32xf32>
    %16 = tpu.matmul %14, %15, %cst_14 {dimension_numbers = #tpu.dot_dimension_numbers<[1], [0], [0], [1], [0, 0, 1, 1], [], []>} : vector<8x128xf32>, vector<128x32xf32>, vector<8x32xf32> -> vector<8x32xf32>
    %c0_15 = arith.constant 0 : index
    %c0_16 = arith.constant 0 : index
    %17 = vector.load %arg7[%c0_15, %c0_16] : memref<1x32xf32, #tpu.memory_space<vmem>>, vector<1x32xf32>
    %18 = vector.broadcast %17 : vector<1x32xf32> to vector<8x32xf32>
    %19 = arith.addf %16, %18 : vector<8x32xf32>
    %cst_17 = arith.constant 0.000000e+00 : f32
    %20 = vector.broadcast %cst_17 : f32 to vector<8x32xf32>
    %21 = arith.maximumf %19, %20 : vector<8x32xf32>
    %c0_18 = arith.constant 0 : index
    %c0_19 = arith.constant 0 : index
    %22 = vector.load %arg8[%c0_18, %c0_19] : memref<32x8xf32, #tpu.memory_space<vmem>>, vector<32x8xf32>
    %cst_20 = arith.constant dense<0.000000e+00> : vector<8x8xf32>
    %23 = tpu.matmul %21, %22, %cst_20 {dimension_numbers = #tpu.dot_dimension_numbers<[1], [0], [0], [1], [0, 0, 1, 1], [], []>} : vector<8x32xf32>, vector<32x8xf32>, vector<8x8xf32> -> vector<8x8xf32>
    %c0_21 = arith.constant 0 : index
    %c0_22 = arith.constant 0 : index
    %24 = vector.load %arg9[%c0_21, %c0_22] : memref<1x8xf32, #tpu.memory_space<vmem>>, vector<1x8xf32>
    %25 = vector.broadcast %24 : vector<1x8xf32> to vector<8x8xf32>
    %26 = arith.addf %23, %25 : vector<8x8xf32>
    %cst_23 = arith.constant 0.000000e+00 : f32
    %27 = vector.broadcast %cst_23 : f32 to vector<8x8xf32>
    %28 = arith.maximumf %26, %27 : vector<8x8xf32>
    %c0_24 = arith.constant 0 : index
    %c0_25 = arith.constant 0 : index
    %29 = vector.load %arg1[%c0_24, %c0_25] : memref<8x8xf32, #tpu.memory_space<vmem>>, vector<8x8xf32>
    %cst_26 = arith.constant dense<0.000000e+00> : vector<8x8xf32>
    %30 = tpu.matmul %29, %28, %cst_26 {dimension_numbers = #tpu.dot_dimension_numbers<[1], [0], [0], [1], [0, 0, 1, 1], [], []>} : vector<8x8xf32>, vector<8x8xf32>, vector<8x8xf32> -> vector<8x8xf32>
    %c0_27 = arith.constant 0 : index
    %c0_28 = arith.constant 0 : index
    %31 = vector.load %arg10[%c0_27, %c0_28] : memref<8x32xf32, #tpu.memory_space<vmem>>, vector<8x32xf32>
    %cst_29 = arith.constant dense<0.000000e+00> : vector<8x32xf32>
    %32 = tpu.matmul %30, %31, %cst_29 {dimension_numbers = #tpu.dot_dimension_numbers<[1], [0], [0], [1], [0, 0, 1, 1], [], []>} : vector<8x8xf32>, vector<8x32xf32>, vector<8x32xf32> -> vector<8x32xf32>
    %c0_30 = arith.constant 0 : index
    %c0_31 = arith.constant 0 : index
    %33 = vector.load %arg12[%c0_30, %c0_31] : memref<1x32xf32, #tpu.memory_space<vmem>>, vector<1x32xf32>
    %34 = vector.broadcast %33 : vector<1x32xf32> to vector<8x32xf32>
    %35 = arith.addf %32, %34 : vector<8x32xf32>
    %cst_32 = arith.constant 0.000000e+00 : f32
    %36 = vector.broadcast %cst_32 : f32 to vector<2x8xf32>
    %cst_33 = arith.constant 0.000000e+00 : f32
    %37 = vector.broadcast %cst_33 : f32 to vector<2x8xf32>
    %38 = vector.extract_strided_slice %35 {offsets = [0, 0], sizes = [2, 32], strides = [1, 1]} : vector<8x32xf32> to vector<2x32xf32>
    %c0_34 = arith.constant 0 : index
    %c0_35 = arith.constant 0 : index
    %39 = vector.load %arg11[%c0_34, %c0_35] : memref<8x32xf32, #tpu.memory_space<vmem>>, vector<8x32xf32>
    %cst_36 = arith.constant dense<0.000000e+00> : vector<2x32xf32>
    %40 = tpu.matmul %36, %39, %cst_36 {dimension_numbers = #tpu.dot_dimension_numbers<[1], [0], [0], [1], [0, 0, 1, 1], [], []>} : vector<2x8xf32>, vector<8x32xf32>, vector<2x32xf32> -> vector<2x32xf32>
    %41 = arith.addf %38, %40 : vector<2x32xf32>
    %42 = vector.extract_strided_slice %41 {offsets = [0, 0], sizes = [2, 8], strides = [1, 1]} : vector<2x32xf32> to vector<2x8xf32>
    %43 = arith.negf %42 : vector<2x8xf32>
    %44 = math.exp %43 : vector<2x8xf32>
    %cst_37 = arith.constant 1.000000e+00 : f32
    %45 = vector.broadcast %cst_37 : f32 to vector<2x8xf32>
    %46 = arith.addf %45, %44 : vector<2x8xf32>
    %47 = arith.divf %45, %46 : vector<2x8xf32>
    %48 = vector.extract_strided_slice %41 {offsets = [0, 8], sizes = [2, 8], strides = [1, 1]} : vector<2x32xf32> to vector<2x8xf32>
    %49 = arith.negf %48 : vector<2x8xf32>
    %50 = math.exp %49 : vector<2x8xf32>
    %cst_38 = arith.constant 1.000000e+00 : f32
    %51 = vector.broadcast %cst_38 : f32 to vector<2x8xf32>
    %52 = arith.addf %51, %50 : vector<2x8xf32>
    %53 = arith.divf %51, %52 : vector<2x8xf32>
    %54 = vector.extract_strided_slice %41 {offsets = [0, 16], sizes = [2, 8], strides = [1, 1]} : vector<2x32xf32> to vector<2x8xf32>
    %55 = math.tanh %54 : vector<2x8xf32>
    %56 = vector.extract_strided_slice %41 {offsets = [0, 24], sizes = [2, 8], strides = [1, 1]} : vector<2x32xf32> to vector<2x8xf32>
    %57 = arith.negf %56 : vector<2x8xf32>
    %58 = math.exp %57 : vector<2x8xf32>
    %cst_39 = arith.constant 1.000000e+00 : f32
    %59 = vector.broadcast %cst_39 : f32 to vector<2x8xf32>
    %60 = arith.addf %59, %58 : vector<2x8xf32>
    %61 = arith.divf %59, %60 : vector<2x8xf32>
    %62 = arith.mulf %53, %37 : vector<2x8xf32>
    %63 = arith.mulf %47, %55 : vector<2x8xf32>
    %64 = arith.addf %62, %63 : vector<2x8xf32>
    %65 = math.tanh %64 : vector<2x8xf32>
    %66 = arith.mulf %61, %65 : vector<2x8xf32>
    %67 = vector.extract_strided_slice %35 {offsets = [2, 0], sizes = [2, 32], strides = [1, 1]} : vector<8x32xf32> to vector<2x32xf32>
    %c0_40 = arith.constant 0 : index
    %c0_41 = arith.constant 0 : index
    %68 = vector.load %arg11[%c0_40, %c0_41] : memref<8x32xf32, #tpu.memory_space<vmem>>, vector<8x32xf32>
    %cst_42 = arith.constant dense<0.000000e+00> : vector<2x32xf32>
    %69 = tpu.matmul %66, %68, %cst_42 {dimension_numbers = #tpu.dot_dimension_numbers<[1], [0], [0], [1], [0, 0, 1, 1], [], []>} : vector<2x8xf32>, vector<8x32xf32>, vector<2x32xf32> -> vector<2x32xf32>
    %70 = arith.addf %67, %69 : vector<2x32xf32>
    %71 = vector.extract_strided_slice %70 {offsets = [0, 0], sizes = [2, 8], strides = [1, 1]} : vector<2x32xf32> to vector<2x8xf32>
    %72 = arith.negf %71 : vector<2x8xf32>
    %73 = math.exp %72 : vector<2x8xf32>
    %cst_43 = arith.constant 1.000000e+00 : f32
    %74 = vector.broadcast %cst_43 : f32 to vector<2x8xf32>
    %75 = arith.addf %74, %73 : vector<2x8xf32>
    %76 = arith.divf %74, %75 : vector<2x8xf32>
    %77 = vector.extract_strided_slice %70 {offsets = [0, 8], sizes = [2, 8], strides = [1, 1]} : vector<2x32xf32> to vector<2x8xf32>
    %78 = arith.negf %77 : vector<2x8xf32>
    %79 = math.exp %78 : vector<2x8xf32>
    %cst_44 = arith.constant 1.000000e+00 : f32
    %80 = vector.broadcast %cst_44 : f32 to vector<2x8xf32>
    %81 = arith.addf %80, %79 : vector<2x8xf32>
    %82 = arith.divf %80, %81 : vector<2x8xf32>
    %83 = vector.extract_strided_slice %70 {offsets = [0, 16], sizes = [2, 8], strides = [1, 1]} : vector<2x32xf32> to vector<2x8xf32>
    %84 = math.tanh %83 : vector<2x8xf32>
    %85 = vector.extract_strided_slice %70 {offsets = [0, 24], sizes = [2, 8], strides = [1, 1]} : vector<2x32xf32> to vector<2x8xf32>
    %86 = arith.negf %85 : vector<2x8xf32>
    %87 = math.exp %86 : vector<2x8xf32>
    %cst_45 = arith.constant 1.000000e+00 : f32
    %88 = vector.broadcast %cst_45 : f32 to vector<2x8xf32>
    %89 = arith.addf %88, %87 : vector<2x8xf32>
    %90 = arith.divf %88, %89 : vector<2x8xf32>
    %91 = arith.mulf %82, %64 : vector<2x8xf32>
    %92 = arith.mulf %76, %84 : vector<2x8xf32>
    %93 = arith.addf %91, %92 : vector<2x8xf32>
    %94 = math.tanh %93 : vector<2x8xf32>
    %95 = arith.mulf %90, %94 : vector<2x8xf32>
    %96 = vector.extract_strided_slice %35 {offsets = [4, 0], sizes = [2, 32], strides = [1, 1]} : vector<8x32xf32> to vector<2x32xf32>
    %c0_46 = arith.constant 0 : index
    %c0_47 = arith.constant 0 : index
    %97 = vector.load %arg11[%c0_46, %c0_47] : memref<8x32xf32, #tpu.memory_space<vmem>>, vector<8x32xf32>
    %cst_48 = arith.constant dense<0.000000e+00> : vector<2x32xf32>
    %98 = tpu.matmul %95, %97, %cst_48 {dimension_numbers = #tpu.dot_dimension_numbers<[1], [0], [0], [1], [0, 0, 1, 1], [], []>} : vector<2x8xf32>, vector<8x32xf32>, vector<2x32xf32> -> vector<2x32xf32>
    %99 = arith.addf %96, %98 : vector<2x32xf32>
    %100 = vector.extract_strided_slice %99 {offsets = [0, 0], sizes = [2, 8], strides = [1, 1]} : vector<2x32xf32> to vector<2x8xf32>
    %101 = arith.negf %100 : vector<2x8xf32>
    %102 = math.exp %101 : vector<2x8xf32>
    %cst_49 = arith.constant 1.000000e+00 : f32
    %103 = vector.broadcast %cst_49 : f32 to vector<2x8xf32>
    %104 = arith.addf %103, %102 : vector<2x8xf32>
    %105 = arith.divf %103, %104 : vector<2x8xf32>
    %106 = vector.extract_strided_slice %99 {offsets = [0, 8], sizes = [2, 8], strides = [1, 1]} : vector<2x32xf32> to vector<2x8xf32>
    %107 = arith.negf %106 : vector<2x8xf32>
    %108 = math.exp %107 : vector<2x8xf32>
    %cst_50 = arith.constant 1.000000e+00 : f32
    %109 = vector.broadcast %cst_50 : f32 to vector<2x8xf32>
    %110 = arith.addf %109, %108 : vector<2x8xf32>
    %111 = arith.divf %109, %110 : vector<2x8xf32>
    %112 = vector.extract_strided_slice %99 {offsets = [0, 16], sizes = [2, 8], strides = [1, 1]} : vector<2x32xf32> to vector<2x8xf32>
    %113 = math.tanh %112 : vector<2x8xf32>
    %114 = vector.extract_strided_slice %99 {offsets = [0, 24], sizes = [2, 8], strides = [1, 1]} : vector<2x32xf32> to vector<2x8xf32>
    %115 = arith.negf %114 : vector<2x8xf32>
    %116 = math.exp %115 : vector<2x8xf32>
    %cst_51 = arith.constant 1.000000e+00 : f32
    %117 = vector.broadcast %cst_51 : f32 to vector<2x8xf32>
    %118 = arith.addf %117, %116 : vector<2x8xf32>
    %119 = arith.divf %117, %118 : vector<2x8xf32>
    %120 = arith.mulf %111, %93 : vector<2x8xf32>
    %121 = arith.mulf %105, %113 : vector<2x8xf32>
    %122 = arith.addf %120, %121 : vector<2x8xf32>
    %123 = math.tanh %122 : vector<2x8xf32>
    %124 = arith.mulf %119, %123 : vector<2x8xf32>
    %125 = vector.extract_strided_slice %35 {offsets = [6, 0], sizes = [2, 32], strides = [1, 1]} : vector<8x32xf32> to vector<2x32xf32>
    %c0_52 = arith.constant 0 : index
    %c0_53 = arith.constant 0 : index
    %126 = vector.load %arg11[%c0_52, %c0_53] : memref<8x32xf32, #tpu.memory_space<vmem>>, vector<8x32xf32>
    %cst_54 = arith.constant dense<0.000000e+00> : vector<2x32xf32>
    %127 = tpu.matmul %124, %126, %cst_54 {dimension_numbers = #tpu.dot_dimension_numbers<[1], [0], [0], [1], [0, 0, 1, 1], [], []>} : vector<2x8xf32>, vector<8x32xf32>, vector<2x32xf32> -> vector<2x32xf32>
    %128 = arith.addf %125, %127 : vector<2x32xf32>
    %129 = vector.extract_strided_slice %128 {offsets = [0, 0], sizes = [2, 8], strides = [1, 1]} : vector<2x32xf32> to vector<2x8xf32>
    %130 = arith.negf %129 : vector<2x8xf32>
    %131 = math.exp %130 : vector<2x8xf32>
    %cst_55 = arith.constant 1.000000e+00 : f32
    %132 = vector.broadcast %cst_55 : f32 to vector<2x8xf32>
    %133 = arith.addf %132, %131 : vector<2x8xf32>
    %134 = arith.divf %132, %133 : vector<2x8xf32>
    %135 = vector.extract_strided_slice %128 {offsets = [0, 8], sizes = [2, 8], strides = [1, 1]} : vector<2x32xf32> to vector<2x8xf32>
    %136 = arith.negf %135 : vector<2x8xf32>
    %137 = math.exp %136 : vector<2x8xf32>
    %cst_56 = arith.constant 1.000000e+00 : f32
    %138 = vector.broadcast %cst_56 : f32 to vector<2x8xf32>
    %139 = arith.addf %138, %137 : vector<2x8xf32>
    %140 = arith.divf %138, %139 : vector<2x8xf32>
    %141 = vector.extract_strided_slice %128 {offsets = [0, 16], sizes = [2, 8], strides = [1, 1]} : vector<2x32xf32> to vector<2x8xf32>
    %142 = math.tanh %141 : vector<2x8xf32>
    %143 = vector.extract_strided_slice %128 {offsets = [0, 24], sizes = [2, 8], strides = [1, 1]} : vector<2x32xf32> to vector<2x8xf32>
    %144 = arith.negf %143 : vector<2x8xf32>
    %145 = math.exp %144 : vector<2x8xf32>
    %cst_57 = arith.constant 1.000000e+00 : f32
    %146 = vector.broadcast %cst_57 : f32 to vector<2x8xf32>
    %147 = arith.addf %146, %145 : vector<2x8xf32>
    %148 = arith.divf %146, %147 : vector<2x8xf32>
    %149 = arith.mulf %140, %122 : vector<2x8xf32>
    %150 = arith.mulf %134, %142 : vector<2x8xf32>
    %151 = arith.addf %149, %150 : vector<2x8xf32>
    %152 = math.tanh %151 : vector<2x8xf32>
    %153 = arith.mulf %148, %152 : vector<2x8xf32>
    %c0_58 = arith.constant 0 : index
    %c0_59 = arith.constant 0 : index
    %154 = vector.load %arg13[%c0_58, %c0_59] : memref<8x64xf32, #tpu.memory_space<vmem>>, vector<8x64xf32>
    %cst_60 = arith.constant dense<0.000000e+00> : vector<2x64xf32>
    %155 = tpu.matmul %153, %154, %cst_60 {dimension_numbers = #tpu.dot_dimension_numbers<[1], [0], [0], [1], [0, 0, 1, 1], [], []>} : vector<2x8xf32>, vector<8x64xf32>, vector<2x64xf32> -> vector<2x64xf32>
    %c0_61 = arith.constant 0 : index
    %c0_62 = arith.constant 0 : index
    %156 = vector.load %arg14[%c0_61, %c0_62] : memref<1x64xf32, #tpu.memory_space<vmem>>, vector<1x64xf32>
    %157 = vector.broadcast %156 : vector<1x64xf32> to vector<2x64xf32>
    %158 = arith.addf %155, %157 : vector<2x64xf32>
    %cst_63 = arith.constant 0.000000e+00 : f32
    %159 = vector.broadcast %cst_63 : f32 to vector<2x64xf32>
    %160 = arith.maximumf %158, %159 : vector<2x64xf32>
    %c0_64 = arith.constant 0 : index
    %c0_65 = arith.constant 0 : index
    %161 = vector.load %arg15[%c0_64, %c0_65] : memref<64x32xf32, #tpu.memory_space<vmem>>, vector<64x32xf32>
    %cst_66 = arith.constant dense<0.000000e+00> : vector<2x32xf32>
    %162 = tpu.matmul %160, %161, %cst_66 {dimension_numbers = #tpu.dot_dimension_numbers<[1], [0], [0], [1], [0, 0, 1, 1], [], []>} : vector<2x64xf32>, vector<64x32xf32>, vector<2x32xf32> -> vector<2x32xf32>
    %c0_67 = arith.constant 0 : index
    %c0_68 = arith.constant 0 : index
    %163 = vector.load %arg16[%c0_67, %c0_68] : memref<1x32xf32, #tpu.memory_space<vmem>>, vector<1x32xf32>
    %164 = vector.broadcast %163 : vector<1x32xf32> to vector<2x32xf32>
    %165 = arith.addf %162, %164 : vector<2x32xf32>
    %cst_69 = arith.constant 0.000000e+00 : f32
    %166 = vector.broadcast %cst_69 : f32 to vector<2x32xf32>
    %167 = arith.maximumf %165, %166 : vector<2x32xf32>
    %c0_70 = arith.constant 0 : index
    %c0_71 = arith.constant 0 : index
    %168 = vector.load %arg17[%c0_70, %c0_71] : memref<32x4xf32, #tpu.memory_space<vmem>>, vector<32x4xf32>
    %cst_72 = arith.constant dense<0.000000e+00> : vector<2x4xf32>
    %169 = tpu.matmul %167, %168, %cst_72 {dimension_numbers = #tpu.dot_dimension_numbers<[1], [0], [0], [1], [0, 0, 1, 1], [], []>} : vector<2x32xf32>, vector<32x4xf32>, vector<2x4xf32> -> vector<2x4xf32>
    %c0_73 = arith.constant 0 : index
    %c0_74 = arith.constant 0 : index
    %170 = vector.load %arg18[%c0_73, %c0_74] : memref<1x4xf32, #tpu.memory_space<vmem>>, vector<1x4xf32>
    %171 = vector.broadcast %170 : vector<1x4xf32> to vector<2x4xf32>
    %172 = arith.addf %169, %171 : vector<2x4xf32>
    %c0_75 = arith.constant 0 : index
    %c0_76 = arith.constant 0 : index
    %173 = vector.load %arg19[%c0_75, %c0_76] : memref<2x4xf32, #tpu.memory_space<vmem>>, vector<2x4xf32>
    tpu.vector_store %arg19[%c0_75, %c0_76], %172 {strides = array<i32>} : memref<2x4xf32, #tpu.memory_space<vmem>>, vector<2x4xf32>,
    return
  }
}

</mosaic_0001>

<bundles_post_ra>
// kernel: master_forward.1
= control target key start
LH: loop header
LB: loop body
LE: loop exit
PB: predicated region body
PF: predicated region fallthrough
CT: control target
= control target key end

     0   :  { %s3074_s0 = inlined_call_operand.vmem [shape: f32[8,256], index: 0, kind: input, shape index: {}]   ;;  %s3075_s1 = inlined_call_operand.vmem [shape: f32[8,8], index: 1, kind: input, shape index: {}]   ;;  %s3076_s2 = inlined_call_operand.vmem [shape: f32[256,512], index: 2, kind: input, shape index: {}]   ;;  %s3077_s3 = inlined_call_operand.vmem [shape: f32[1,512], index: 3, kind: input, shape index: {}]   ;;  %s3078_s4 = inlined_call_operand.vmem [shape: f32[512,128], index: 4, kind: input, shape index: {}]   ;;  %s3079_s5 = inlined_call_operand.vmem [shape: f32[1,128], index: 5, kind: input, shape index: {}]   ;;  %s3080_s6 = inlined_call_operand.vmem [shape: f32[128,32], index: 6, kind: input, shape index: {}]   ;;  %s3081_s7 = inlined_call_operand.vmem [shape: f32[1,32], index: 7, kind: input, shape index: {}]   ;;  %s3082_s8 = inlined_call_operand.vmem [shape: f32[32,8], index: 8, kind: input, shape index: {}]   ;;  %s3083_s9 = inlined_call_operand.vmem [shape: f32[1,8], index: 9, kind: input, shape index: {}]   ;;  %s3084_s10 = inlined_call_operand.vmem [shape: f32[8,32], index: 10, kind: input, shape index: {}]   ;;  %s3085_s11 = inlined_call_operand.vmem [shape: f32[8,32], index: 11, kind: input, shape index: {}]   ;;  %s3086_s12 = inlined_call_operand.vmem [shape: f32[1,32], index: 12, kind: input, shape index: {}]   ;;  %s3087_s13 = inlined_call_operand.vmem [shape: f32[8,64], index: 13, kind: input, shape index: {}]   ;;  %s3088_s14 = inlined_call_operand.vmem [shape: f32[1,64], index: 14, kind: input, shape index: {}]   ;;  %s3089_s15 = inlined_call_operand.vmem [shape: f32[64,32], index: 15, kind: input, shape index: {}]   ;;  %s3090_s16 = inlined_call_operand.vmem [shape: f32[1,32], index: 16, kind: input, shape index: {}]   ;;  %s3091_s17 = inlined_call_operand.vmem [shape: f32[32,4], index: 17, kind: input, shape index: {}]   ;;  %s3092_s18 = inlined_call_operand.vmem [shape: f32[1,4], index: 18, kind: input, shape index: {}]   ;;  %s3093_s19 = inlined_call_operand.hbm [shape: f32[2,4], index: 19, kind: output, shape index: {}]  }
   0x1   :  { %3096 = sst [smem:[#allocation5_spill]] %s3074_s0 }
   0x2   :  { %3097 = sst [smem:[#allocation6_spill]] %s3075_s1 }
   0x3   :  { %3098 = sst [smem:[#allocation7_spill]] %s3076_s2 }
   0x4   :  { %3099 = sst [smem:[#allocation8_spill]] %s3077_s3 }
   0x5   :  { %s3100_s20 = sld [smem:[#allocation7_spill]]  ;;  %s3101_s21 = sld [smem:[#allocation5_spill]] }
   0xb   :  { %v66_v0 = vld [vmem:[%s3100_s20 + $0x8] sm:$0xff]  ;;  %v68_v2 = vld [vmem:[%s3100_s20 + $0x18] sm:$0xff]  ;;  %v65_v5 = vld [vmem:[%s3100_s20] sm:$0xff] }
   0xc   :  { %v70_v1 = vld [vmem:[%s3100_s20 + $0x28] sm:$0xff]  ;;  %v72_v4 = vld [vmem:[%s3100_s20 + $0x38] sm:$0xff]  ;;  %v69_v6 = vld [vmem:[%s3100_s20 + $0x20] sm:$0xff] }
   0xd   :  { %v1854_v3 = vpack.c.bf16 %v70_v1, %v66_v0  ;;  %v1918_v7 = vpack.c.bf16 %v72_v4, %v68_v2  ;;  %v1856_v8 = vpack.c.bf16 %v69_v6, %v65_v5  ;;  %v67_v9 = vld [vmem:[%s3100_s20 + $0x10] sm:$0xff]  ;;  %v74_v11 = vld [vmem:[%s3100_s20 + $0x48] sm:$0xff]  ;;  %v76_v14 = vld [vmem:[%s3100_s20 + $0x58] sm:$0xff] }
   0xe   :  { %v71_v10 = vld [vmem:[%s3100_s20 + $0x30] sm:$0xff]  ;;  %v78_v13 = vld [vmem:[%s3100_s20 + $0x68] sm:$0xff]  ;;  %v80_v15 = vld [vmem:[%s3100_s20 + $0x78] sm:$0xff] }
   0xf   :  { %1855 = vmatprep.subr.bf16.mxu0 %v1854_v3  ;;  %v1920_v12 = vpack.c.bf16 %v71_v10, %v67_v9  ;;  %1919 = vmatprep.subr.bf16.mxu1 %v1918_v7  ;;  %v1858_v16 = vpack.c.bf16 %v78_v13, %v74_v11  ;;  %v1922_v17 = vpack.c.bf16 %v80_v15, %v76_v14  ;;  %v73_v18 = vld [vmem:[%s3100_s20 + $0x40] sm:$0xff]  ;;  %v75_v20 = vld [vmem:[%s3100_s20 + $0x50] sm:$0xff]  ;;  %v82_v23 = vld [vmem:[%s3100_s20 + $0x88] sm:$0xff] }
  0x10   :  { %1857 = vmatpush1.bf16.msra.mxu0 %v1856_v8  ;;  %v77_v19 = vld [vmem:[%s3100_s20 + $0x60] sm:$0xff]  ;;  %v79_v22 = vld [vmem:[%s3100_s20 + $0x70] sm:$0xff]  ;;  %v86_v24 = vld [vmem:[%s3100_s20 + $0xa8] sm:$0xff] }
  0x11   :  { %1921 = vmatpush1.bf16.msra.mxu1 %v1920_v12  ;;  %v1860_v21 = vpack.c.bf16 %v77_v19, %v73_v18  ;;  %1859 = vmatprep.subr.bf16.mxu0 %v1858_v16  ;;  %v1924_v25 = vpack.c.bf16 %v79_v22, %v75_v20  ;;  %v1862_v26 = vpack.c.bf16 %v86_v24, %v82_v23  ;;  %v84_v27 = vld [vmem:[%s3100_s20 + $0x98] sm:$0xff]  ;;  %v81_v29 = vld [vmem:[%s3100_s20 + $0x80] sm:$0xff]  ;;  %v83_v32 = vld [vmem:[%s3100_s20 + $0x90] sm:$0xff] }
  0x12   :  { %1923 = vmatprep.subr.bf16.mxu1 %v1922_v17  ;;  %v88_v28 = vld [vmem:[%s3100_s20 + $0xb8] sm:$0xff]  ;;  %v85_v31 = vld [vmem:[%s3100_s20 + $0xa0] sm:$0xff]  ;;  %v87_v33 = vld [vmem:[%s3100_s20 + $0xb0] sm:$0xff] }
  0x13   :  { %v1926_v30 = vpack.c.bf16 %v88_v28, %v84_v27  ;;  %v1864_v34 = vpack.c.bf16 %v85_v31, %v81_v29  ;;  %v90_v35 = vld [vmem:[%s3100_s20 + $0xc8] sm:$0xff]  ;;  %v92_v37 = vld [vmem:[%s3100_s20 + $0xd8] sm:$0xff]  ;;  %v1928_v38 = vpack.c.bf16 %v87_v33, %v83_v32  ;;  %v89_v41 = vld [vmem:[%s3100_s20 + $0xc0] sm:$0xff] }
  0x14   :  { %1861 = vmatpush1.bf16.msra.mxu0 %v1860_v21  ;;  %v94_v36 = vld [vmem:[%s3100_s20 + $0xe8] sm:$0xff]  ;;  %v96_v40 = vld [vmem:[%s3100_s20 + $0xf8] sm:$0xff]  ;;  %v93_v42 = vld [vmem:[%s3100_s20 + $0xe0] sm:$0xff] }
  0x15   :  { %1925 = vmatpush1.bf16.msra.mxu1 %v1924_v25  ;;  %1863 = vmatprep.subr.bf16.mxu0 %v1862_v26  ;;  %v1866_v39 = vpack.c.bf16 %v94_v36, %v90_v35  ;;  %v1930_v43 = vpack.c.bf16 %v96_v40, %v92_v37  ;;  %v91_v44 = vld [vmem:[%s3100_s20 + $0xd0] sm:$0xff]  ;;  %v98_v46 = vld [vmem:[%s3100_s20 + $0x108] sm:$0xff]  ;;  %v100_v48 = vld [vmem:[%s3100_s20 + $0x118] sm:$0xff]  ;;  %v1868_v50 = vpack.c.bf16 %v93_v42, %v89_v41 }
  0x16   :  { %1927 = vmatprep.subr.bf16.mxu1 %v1926_v30  ;;  %v95_v45 = vld [vmem:[%s3100_s20 + $0xf0] sm:$0xff]  ;;  %v102_v47 = vld [vmem:[%s3100_s20 + $0x128] sm:$0xff]  ;;  %v104_v49 = vld [vmem:[%s3100_s20 + $0x138] sm:$0xff] }
  0x17   :  { %v1932_v51 = vpack.c.bf16 %v95_v45, %v91_v44  ;;  %v1870_v52 = vpack.c.bf16 %v102_v47, %v98_v46  ;;  %v97_v53 = vld [vmem:[%s3100_s20 + $0x100] sm:$0xff]  ;;  %v99_v55 = vld [vmem:[%s3100_s20 + $0x110] sm:$0xff]  ;;  %v1934_v56 = vpack.c.bf16 %v104_v49, %v100_v48  ;;  %v106_v58 = vld [vmem:[%s3100_s20 + $0x148] sm:$0xff] }
  0x18   :  { %1865 = vmatpush1.bf16.msra.mxu0 %v1864_v34  ;;  %v101_v54 = vld [vmem:[%s3100_s20 + $0x120] sm:$0xff]  ;;  %v103_v57 = vld [vmem:[%s3100_s20 + $0x130] sm:$0xff]  ;;  %v110_v59 = vld [vmem:[%s3100_s20 + $0x168] sm:$0xff] }
  0x19   :  { %1929 = vmatpush1.bf16.msra.mxu1 %v1928_v38  ;;  %1867 = vmatprep.subr.bf16.mxu0 %v1866_v39  ;;  %v108_v60 = vld [vmem:[%s3100_s20 + $0x158] sm:$0xff]  ;;  %v1872_v62 = vpack.c.bf16 %v101_v54, %v97_v53  ;;  %v1936_v63 = vpack.c.bf16 %v103_v57, %v99_v55  ;;  %v1874_v0 = vpack.c.bf16 %v110_v59, %v106_v58  ;;  %v105_v1 = vld [vmem:[%s3100_s20 + $0x140] sm:$0xff]  ;;  %v107_v3 = vld [vmem:[%s3100_s20 + $0x150] sm:$0xff] }
  0x1a   :  { %1931 = vmatprep.subr.bf16.mxu1 %v1930_v43  ;;  %v112_v61 = vld [vmem:[%s3100_s20 + $0x178] sm:$0xff]  ;;  %v109_v2 = vld [vmem:[%s3100_s20 + $0x160] sm:$0xff]  ;;  %v111_v5 = vld [vmem:[%s3100_s20 + $0x170] sm:$0xff] }
  0x1b   :  { %v1938_v4 = vpack.c.bf16 %v112_v61, %v108_v60  ;;  %v114_v6 = vld [vmem:[%s3100_s20 + $0x188] sm:$0xff]  ;;  %v116_v8 = vld [vmem:[%s3100_s20 + $0x198] sm:$0xff]  ;;  %v1876_v10 = vpack.c.bf16 %v109_v2, %v105_v1  ;;  %v1940_v11 = vpack.c.bf16 %v111_v5, %v107_v3  ;;  %v113_v13 = vld [vmem:[%s3100_s20 + $0x180] sm:$0xff] }
  0x1c   :  { %1869 = vmatpush1.bf16.msra.mxu0 %v1868_v50  ;;  %v118_v7 = vld [vmem:[%s3100_s20 + $0x1a8] sm:$0xff]  ;;  %v120_v9 = vld [vmem:[%s3100_s20 + $0x1b8] sm:$0xff]  ;;  %v117_v14 = vld [vmem:[%s3100_s20 + $0x1a0] sm:$0xff] }
  0x1d   :  { %1933 = vmatpush1.bf16.msra.mxu1 %v1932_v51  ;;  %1871 = vmatprep.subr.bf16.mxu0 %v1870_v52  ;;  %v1878_v12 = vpack.c.bf16 %v118_v7, %v114_v6  ;;  %v115_v15 = vld [vmem:[%s3100_s20 + $0x190] sm:$0xff]  ;;  %v1942_v16 = vpack.c.bf16 %v120_v9, %v116_v8  ;;  %v122_v18 = vld [vmem:[%s3100_s20 + $0x1c8] sm:$0xff]  ;;  %v124_v20 = vld [vmem:[%s3100_s20 + $0x1d8] sm:$0xff]  ;;  %v1880_v22 = vpack.c.bf16 %v117_v14, %v113_v13 }
  0x1e   :  { %1935 = vmatprep.subr.bf16.mxu1 %v1934_v56  ;;  %v119_v17 = vld [vmem:[%s3100_s20 + $0x1b0] sm:$0xff]  ;;  %v126_v19 = vld [vmem:[%s3100_s20 + $0x1e8] sm:$0xff]  ;;  %v128_v21 = vld [vmem:[%s3100_s20 + $0x1f8] sm:$0xff] }
  0x1f   :  { %v1944_v23 = vpack.c.bf16 %v119_v17, %v115_v15  ;;  %v1882_v24 = vpack.c.bf16 %v126_v19, %v122_v18  ;;  %v121_v25 = vld [vmem:[%s3100_s20 + $0x1c0] sm:$0xff]  ;;  %v123_v27 = vld [vmem:[%s3100_s20 + $0x1d0] sm:$0xff]  ;;  %v1946_v28 = vpack.c.bf16 %v128_v21, %v124_v20  ;;  %v130_v30 = vld [vmem:[%s3100_s20 + $0x208] sm:$0xff] }
  0x20   :  { %1873 = vmatpush1.bf16.msra.mxu0 %v1872_v62  ;;  %v125_v26 = vld [vmem:[%s3100_s20 + $0x1e0] sm:$0xff]  ;;  %v127_v29 = vld [vmem:[%s3100_s20 + $0x1f0] sm:$0xff]  ;;  %v134_v31 = vld [vmem:[%s3100_s20 + $0x228] sm:$0xff] }
  0x21   :  { %1937 = vmatpush1.bf16.msra.mxu1 %v1936_v63  ;;  %1875 = vmatprep.subr.bf16.mxu0 %v1874_v0  ;;  %v132_v32 = vld [vmem:[%s3100_s20 + $0x218] sm:$0xff]  ;;  %v1884_v34 = vpack.c.bf16 %v125_v26, %v121_v25  ;;  %v1948_v35 = vpack.c.bf16 %v127_v29, %v123_v27  ;;  %v1886_v36 = vpack.c.bf16 %v134_v31, %v130_v30  ;;  %v129_v37 = vld [vmem:[%s3100_s20 + $0x200] sm:$0xff]  ;;  %v131_v39 = vld [vmem:[%s3100_s20 + $0x210] sm:$0xff] }
  0x22   :  { %1939 = vmatprep.subr.bf16.mxu1 %v1938_v4  ;;  %v136_v33 = vld [vmem:[%s3100_s20 + $0x238] sm:$0xff]  ;;  %v133_v38 = vld [vmem:[%s3100_s20 + $0x220] sm:$0xff]  ;;  %v135_v41 = vld [vmem:[%s3100_s20 + $0x230] sm:$0xff] }
  0x23   :  { %v1950_v40 = vpack.c.bf16 %v136_v33, %v132_v32  ;;  %v138_v42 = vld [vmem:[%s3100_s20 + $0x248] sm:$0xff]  ;;  %v140_v44 = vld [vmem:[%s3100_s20 + $0x258] sm:$0xff]  ;;  %v1888_v46 = vpack.c.bf16 %v133_v38, %v129_v37  ;;  %v1952_v47 = vpack.c.bf16 %v135_v41, %v131_v39  ;;  %v137_v49 = vld [vmem:[%s3100_s20 + $0x240] sm:$0xff] }
  0x24   :  { %1877 = vmatpush1.bf16.msra.mxu0 %v1876_v10  ;;  %v142_v43 = vld [vmem:[%s3100_s20 + $0x268] sm:$0xff]  ;;  %v144_v45 = vld [vmem:[%s3100_s20 + $0x278] sm:$0xff]  ;;  %v141_v50 = vld [vmem:[%s3100_s20 + $0x260] sm:$0xff] }
  0x25   :  { %1941 = vmatpush1.bf16.msra.mxu1 %v1940_v11  ;;  %1879 = vmatprep.subr.bf16.mxu0 %v1878_v12  ;;  %v1890_v48 = vpack.c.bf16 %v142_v43, %v138_v42  ;;  %v139_v51 = vld [vmem:[%s3100_s20 + $0x250] sm:$0xff]  ;;  %v1954_v52 = vpack.c.bf16 %v144_v45, %v140_v44  ;;  %v146_v54 = vld [vmem:[%s3100_s20 + $0x288] sm:$0xff]  ;;  %v148_v56 = vld [vmem:[%s3100_s20 + $0x298] sm:$0xff]  ;;  %v1892_v58 = vpack.c.bf16 %v141_v50, %v137_v49 }
  0x26   :  { %1943 = vmatprep.subr.bf16.mxu1 %v1942_v16  ;;  %v143_v53 = vld [vmem:[%s3100_s20 + $0x270] sm:$0xff]  ;;  %v150_v55 = vld [vmem:[%s3100_s20 + $0x2a8] sm:$0xff]  ;;  %v152_v57 = vld [vmem:[%s3100_s20 + $0x2b8] sm:$0xff] }
  0x27   :  { %v1956_v59 = vpack.c.bf16 %v143_v53, %v139_v51  ;;  %v1894_v60 = vpack.c.bf16 %v150_v55, %v146_v54  ;;  %v145_v61 = vld [vmem:[%s3100_s20 + $0x280] sm:$0xff]  ;;  %v147_v63 = vld [vmem:[%s3100_s20 + $0x290] sm:$0xff]  ;;  %v1958_v0 = vpack.c.bf16 %v152_v57, %v148_v56  ;;  %v154_v2 = vld [vmem:[%s3100_s20 + $0x2c8] sm:$0xff] }
  0x28   :  { %1881 = vmatpush1.bf16.msra.mxu0 %v1880_v22  ;;  %v149_v62 = vld [vmem:[%s3100_s20 + $0x2a0] sm:$0xff]  ;;  %v151_v1 = vld [vmem:[%s3100_s20 + $0x2b0] sm:$0xff]  ;;  %v158_v3 = vld [vmem:[%s3100_s20 + $0x2e8] sm:$0xff] }
  0x29   :  { %1945 = vmatpush1.bf16.msra.mxu1 %v1944_v23  ;;  %1883 = vmatprep.subr.bf16.mxu0 %v1882_v24  ;;  %v156_v4 = vld [vmem:[%s3100_s20 + $0x2d8] sm:$0xff]  ;;  %v1896_v6 = vpack.c.bf16 %v149_v62, %v145_v61  ;;  %v153_v7 = vld [vmem:[%s3100_s20 + $0x2c0] sm:$0xff]  ;;  %v1960_v8 = vpack.c.bf16 %v151_v1, %v147_v63  ;;  %v1898_v9 = vpack.c.bf16 %v158_v3, %v154_v2  ;;  %v155_v11 = vld [vmem:[%s3100_s20 + $0x2d0] sm:$0xff] }
  0x2a   :  { %1947 = vmatprep.subr.bf16.mxu1 %v1946_v28  ;;  %v160_v5 = vld [vmem:[%s3100_s20 + $0x2f8] sm:$0xff]  ;;  %v157_v10 = vld [vmem:[%s3100_s20 + $0x2e0] sm:$0xff]  ;;  %v159_v12 = vld [vmem:[%s3100_s20 + $0x2f0] sm:$0xff] }
  0x2b   :  { %v1962_v13 = vpack.c.bf16 %v160_v5, %v156_v4  ;;  %v162_v14 = vld [vmem:[%s3100_s20 + $0x308] sm:$0xff]  ;;  %v164_v17 = vld [vmem:[%s3100_s20 + $0x318] sm:$0xff]  ;;  %v1900_v19 = vpack.c.bf16 %v157_v10, %v153_v7  ;;  %v1964_v20 = vpack.c.bf16 %v159_v12, %v155_v11  ;;  %v161_v22 = vld [vmem:[%s3100_s20 + $0x300] sm:$0xff] }
  0x2c   :  { %1885 = vmatpush1.bf16.msra.mxu0 %v1884_v34  ;;  %v166_v15 = vld [vmem:[%s3100_s20 + $0x328] sm:$0xff]  ;;  %v168_v18 = vld [vmem:[%s3100_s20 + $0x338] sm:$0xff]  ;;  %v165_v23 = vld [vmem:[%s3100_s20 + $0x320] sm:$0xff] }
  0x2d   :  { %1949 = vmatpush1.bf16.msra.mxu1 %v1948_v35  ;;  %1887 = vmatprep.subr.bf16.mxu0 %v1886_v36  ;;  %v64_v16 = vld [vmem:[%s3101_s21 + $0x8] sm:$0xff]  ;;  %v1902_v21 = vpack.c.bf16 %v166_v15, %v162_v14  ;;  %v163_v24 = vld [vmem:[%s3100_s20 + $0x310] sm:$0xff]  ;;  %v1966_v25 = vpack.c.bf16 %v168_v18, %v164_v17  ;;  %v172_v29 = vld [vmem:[%s3100_s20 + $0x358] sm:$0xff]  ;;  %v1904_v31 = vpack.c.bf16 %v165_v23, %v161_v22 }
  0x2e   :  { %1951 = vmatprep.subr.bf16.mxu1 %v1950_v40  ;;  %279 = vmatprep.mubr.f32.mxu0 %v64_v16  ;;  %v167_v26 = vld [vmem:[%s3100_s20 + $0x330] sm:$0xff]  ;;  %v170_v27 = vld [vmem:[%s3100_s20 + $0x348] sm:$0xff]  ;;  %v176_v30 = vld [vmem:[%s3100_s20 + $0x378] sm:$0xff] }
  0x2f   :  { %350 = vmatprep.mubr.f32.mxu1 %v64_v16  ;;  %v174_v28 = vld [vmem:[%s3100_s20 + $0x368] sm:$0xff]  ;;  %v1968_v32 = vpack.c.bf16 %v167_v26, %v163_v24  ;;  %v169_v34 = vld [vmem:[%s3100_s20 + $0x340] sm:$0xff]  ;;  %v171_v36 = vld [vmem:[%s3100_s20 + $0x350] sm:$0xff]  ;;  %v1970_v37 = vpack.c.bf16 %v176_v30, %v172_v29 }
  0x30   :  { %1889 = vmatpush1.bf16.msra.mxu0 %v1888_v46  ;;  %v1906_v33 = vpack.c.bf16 %v174_v28, %v170_v27  ;;  %v173_v35 = vld [vmem:[%s3100_s20 + $0x360] sm:$0xff]  ;;  %v175_v38 = vld [vmem:[%s3100_s20 + $0x370] sm:$0xff]  ;;  %v178_v39 = vld [vmem:[%s3100_s20 + $0x388] sm:$0xff] }
  0x31   :  { %1953 = vmatpush1.bf16.msra.mxu1 %v1952_v47  ;;  %1891 = vmatprep.subr.bf16.mxu0 %v1890_v48  ;;  %v182_v40 = vld [vmem:[%s3100_s20 + $0x3a8] sm:$0xff]  ;;  %v180_v41 = vld [vmem:[%s3100_s20 + $0x398] sm:$0xff]  ;;  %v1908_v43 = vpack.c.bf16 %v173_v35, %v169_v34  ;;  %v1972_v44 = vpack.c.bf16 %v175_v38, %v171_v36  ;;  %v177_v46 = vld [vmem:[%s3100_s20 + $0x380] sm:$0xff] }
  0x32   :  { %1955 = vmatprep.subr.bf16.mxu1 %v1954_v52  ;;  %v184_v42 = vld [vmem:[%s3100_s20 + $0x3b8] sm:$0xff]  ;;  %v1910_v45 = vpack.c.bf16 %v182_v40, %v178_v39  ;;  %v181_v47 = vld [vmem:[%s3100_s20 + $0x3a0] sm:$0xff]  ;;  %v179_v48 = vld [vmem:[%s3100_s20 + $0x390] sm:$0xff] }
  0x33   :  { %v1974_v49 = vpack.c.bf16 %v184_v42, %v180_v41  ;;  %v183_v50 = vld [vmem:[%s3100_s20 + $0x3b0] sm:$0xff]  ;;  %v186_v51 = vld [vmem:[%s3100_s20 + $0x3c8] sm:$0xff]  ;;  %v188_v53 = vld [vmem:[%s3100_s20 + $0x3d8] sm:$0xff]  ;;  %v1912_v55 = vpack.c.bf16 %v181_v47, %v177_v46 }
  0x34   :  { %1893 = vmatpush1.bf16.msra.mxu0 %v1892_v58  ;;  %v190_v52 = vld [vmem:[%s3100_s20 + $0x3e8] sm:$0xff]  ;;  %v192_v54 = vld [vmem:[%s3100_s20 + $0x3f8] sm:$0xff]  ;;  %v1976_v56 = vpack.c.bf16 %v183_v50, %v179_v48  ;;  %v185_v58 = vld [vmem:[%s3100_s20 + $0x3c0] sm:$0xff] }
  0x35   :  { %1957 = vmatpush1.bf16.msra.mxu1 %v1956_v59  ;;  %1895 = vmatprep.subr.bf16.mxu0 %v1894_v60  ;;  %v1914_v57 = vpack.c.bf16 %v190_v52, %v186_v51  ;;  %v189_v59 = vld [vmem:[%s3100_s20 + $0x3e0] sm:$0xff]  ;;  %v187_v60 = vld [vmem:[%s3100_s20 + $0x3d0] sm:$0xff]  ;;  %v1978_v61 = vpack.c.bf16 %v192_v54, %v188_v53  ;;  %v410_v2 = vld [vmem:[%s3078_s4 + $0x188] sm:$0xff] }
  0x36   :  { %1959 = vmatprep.subr.bf16.mxu1 %v1958_v0  ;;  %v191_v62 = vld [vmem:[%s3100_s20 + $0x3f0] sm:$0xff]  ;;  %v377_v63 = vld [vmem:[%s3078_s4 + $0x80] sm:$0xff]  ;;  %v378_v0 = vld [vmem:[%s3078_s4 + $0x88] sm:$0xff]  ;;  %v1916_v3 = vpack.c.bf16 %v189_v59, %v185_v58 }
  0x37   :  { %v409_v1 = vld [vmem:[%s3078_s4 + $0x180] sm:$0xff]  ;;  %v1980_v5 = vpack.c.bf16 %v191_v62, %v187_v60  ;;  %v362_v7 = vld [vmem:[%s3078_s4 + $0x8] sm:$0xff] }
  0x38   :  { %1897 = vmatpush1.bf16.msra.mxu0 %v1896_v6  ;;  %v361_v4 = vld [vmem:[%s3078_s4] sm:$0xff]  ;;  %v1982_v6 = vpack.c.bf16 %v378_v0, %v377_v63 }
  0x39   :  { %1961 = vmatpush1.bf16.msra.mxu1 %v1960_v8  ;;  %1899 = vmatprep.subr.bf16.mxu0 %v1898_v9  ;;  %v393_v8 = vld [vmem:[%s3078_s4 + $0x100] sm:$0xff] }
  0x3a   :  { %1963 = vmatprep.subr.bf16.mxu1 %v1962_v13 }
  0x3c   :  { %1901 = vmatpush1.bf16.msra.mxu0 %v1900_v19 }
  0x3d   :  { %1965 = vmatpush1.bf16.msra.mxu1 %v1964_v20  ;;  %1903 = vmatprep.subr.bf16.mxu0 %v1902_v21 }
  0x3e   :  { %1967 = vmatprep.subr.bf16.mxu1 %v1966_v25 }
  0x40   :  { %1905 = vmatpush1.bf16.msra.mxu0 %v1904_v31 }
  0x41   :  { %1969 = vmatpush1.bf16.msra.mxu1 %v1968_v32  ;;  %1907 = vmatprep.subr.bf16.mxu0 %v1906_v33 }
  0x42   :  { %1971 = vmatprep.subr.bf16.mxu1 %v1970_v37 }
  0x44   :  { %1909 = vmatpush1.bf16.msra.mxu0 %v1908_v43 }
  0x45   :  { %1973 = vmatpush1.bf16.msra.mxu1 %v1972_v44  ;;  %1911 = vmatprep.subr.bf16.mxu0 %v1910_v45 }
  0x46   :  { %1975 = vmatprep.subr.bf16.mxu1 %v1974_v49 }
  0x48   :  { %1913 = vmatpush1.bf16.msra.mxu0 %v1912_v55 }
  0x49   :  { %1977 = vmatpush1.bf16.msra.mxu1 %v1976_v56  ;;  %1915 = vmatprep.subr.bf16.mxu0 %v1914_v57 }
  0x4a   :  { %24 = vsyncpa [#allocation3], 0  ;;  %1979 = vmatprep.subr.bf16.mxu1 %v1978_v61  ;;  %v2014_v9 = vpack.c.bf16 %v410_v2, %v409_v1  ;;  %v394_v10 = vld [vmem:[%s3078_s4 + $0x108] sm:$0xff]  ;;  %v379_v11 = vld [vmem:[%s3078_s4 + $0x90] sm:$0xff]  ;;  %v1984_v16 = vpack.c.bf16 %v362_v7, %v361_v4  ;;  %s3102_s26 = sld [smem:[#allocation8_spill]]  ;;  %vm2159_vm0 = vmmov 0  }
  0x4b   :  { %v380_v12 = vld [vmem:[%s3078_s4 + $0x98] sm:$0xff]  ;;  %v411_v13 = vld [vmem:[%s3078_s4 + $0x190] sm:$0xff]  ;;  %v63_v15 = vld [vmem:[%s3101_s21] sm:$0xff]  ;;  %v2016_v17 = vpack.c.bf16 %v394_v10, %v393_v8  ;;  %vm678_vm1 = vcmask 261120   ;;  %s3103_s24 = sld [smem:[#allocation6_spill]]  ;;  %vm754_vm2 = vcmask 64512  }
  0x4c   :  { %v412_v14 = vld [vmem:[%s3078_s4 + $0x198] sm:$0xff]  ;;  %1917 = vmatpush1.bf16.msra.mxu0 %v1916_v3  ;;  %v1986_v18 = vpack.c.bf16 %v380_v12, %v379_v11  ;;  %v363_v19 = vld [vmem:[%s3078_s4 + $0x10] sm:$0xff]  ;;  %v381_v24 = vld [vmem:[%s3078_s4 + $0xa0] sm:$0xff]  ;;  %s2163_s27 = smov 16   ;;  %s2164_s28 = smov 104   ;;  %vm1428_vm3 = vcmask 523264  }
  0x4d   :  { %1981 = vmatpush1.bf16.msra.mxu1 %v1980_v5  ;;  %1983 = vmatprep.subr.bf16.mxu0 %v1982_v6  ;;  %v364_v20 = vld [vmem:[%s3078_s4 + $0x18] sm:$0xff]  ;;  %v395_v21 = vld [vmem:[%s3078_s4 + $0x110] sm:$0xff]  ;;  %v2018_v22 = vpack.c.bf16 %v412_v14, %v411_v13  ;;  %v382_v25 = vld [vmem:[%s3078_s4 + $0xa8] sm:$0xff]  ;;  %s2165_s1 = smov [#allocation2]   ;;  %vm1587_vm4 = vcmask 25600  }
  0x4e   :  { %2015 = vmatprep.subr.bf16.mxu1 %v2014_v9  ;;  %v396_v23 = vld [vmem:[%s3078_s4 + $0x118] sm:$0xff]  ;;  %v413_v26 = vld [vmem:[%s3078_s4 + $0x1a0] sm:$0xff]  ;;  %v414_v27 = vld [vmem:[%s3078_s4 + $0x1a8] sm:$0xff]  ;;  %v1988_v28 = vpack.c.bf16 %v364_v20, %v363_v19  ;;  %v1990_v30 = vpack.c.bf16 %v382_v25, %v381_v24  ;;  %s1595_s22 = sshll.u32 %s2165_s1, 4  ;;  %s1596_s22 = int_to_ptr.vmem [resolvable:$true] %s1595_s22 }
  0x4f   :  { %280 = vmatmul.mubr.f32.vlgmr.msra.gmra.mrb[0].mxu0 %v63_v15  ;;  %v2020_v29 = vpack.c.bf16 %v396_v23, %v395_v21  ;;  %v365_v31 = vld [vmem:[%s3078_s4 + $0x20] sm:$0xff]  ;;  %v366_v32 = vld [vmem:[%s3078_s4 + $0x28] sm:$0xff]  ;;  %v2022_v34 = vpack.c.bf16 %v414_v27, %v413_v26  ;;  %v383_v36 = vld [vmem:[%s3078_s4 + $0xb0] sm:$0xff]  ;;  %p2139_p1 = scmp.lt.s32.totalorder %s1596_s22, %s1596_s22 }
  0x50   :  { %351 = vmatmul.mubr.f32.vlgmr.msra.gmra.mrb[0].mxu1 %v63_v15  ;;  %1985 = vmatpush3.bf16.msra.mxu0 %v1984_v16  ;;  %v397_v33 = vld [vmem:[%s3078_s4 + $0x120] sm:$0xff]  ;;  %v398_v35 = vld [vmem:[%s3078_s4 + $0x128] sm:$0xff]  ;;  %v384_v37 = vld [vmem:[%s3078_s4 + $0xb8] sm:$0xff]  ;;  %v1992_v40 = vpack.c.bf16 %v366_v32, %v365_v31 }
  0x51   :  { %2017 = vmatpush3.bf16.msra.mxu1 %v2016_v17  ;;  %1987 = vmatprep.subr.bf16.mxu0 %v1986_v18  ;;  %v415_v38 = vld [vmem:[%s3078_s4 + $0x1b0] sm:$0xff]  ;;  %v416_v39 = vld [vmem:[%s3078_s4 + $0x1b8] sm:$0xff]  ;;  %v2024_v41 = vpack.c.bf16 %v398_v35, %v397_v33  ;;  %v1994_v42 = vpack.c.bf16 %v384_v37, %v383_v36  ;;  %v385_v48 = vld [vmem:[%s3078_s4 + $0xc0] sm:$0xff]  ;;  %v195_v35 = vlaneseq }
  0x52   :  { %2019 = vmatprep.subr.bf16.mxu1 %v2018_v22  ;;  %v367_v43 = vld [vmem:[%s3078_s4 + $0x30] sm:$0xff]  ;;  %v368_v44 = vld [vmem:[%s3078_s4 + $0x38] sm:$0xff]  ;;  %v2026_v46 = vpack.c.bf16 %v416_v39, %v415_v38  ;;  %v386_v49 = vld [vmem:[%s3078_s4 + $0xc8] sm:$0xff] }
  0x53   :  { %v399_v45 = vld [vmem:[%s3078_s4 + $0x130] sm:$0xff]  ;;  %v400_v47 = vld [vmem:[%s3078_s4 + $0x138] sm:$0xff]  ;;  %v417_v50 = vld [vmem:[%s3078_s4 + $0x1c0] sm:$0xff]  ;;  %v1996_v52 = vpack.c.bf16 %v368_v44, %v367_v43  ;;  %v1998_v54 = vpack.c.bf16 %v386_v49, %v385_v48  ;;  %v196_v36 = vshrl.u32 %v195_v35, 7 }
  0x54   :  { %1989 = vmatpush3.bf16.msra.mxu0 %v1988_v28  ;;  %v418_v51 = vld [vmem:[%s3078_s4 + $0x1c8] sm:$0xff]  ;;  %v2028_v53 = vpack.c.bf16 %v400_v47, %v399_v45  ;;  %v369_v55 = vld [vmem:[%s3078_s4 + $0x40] sm:$0xff]  ;;  %v387_v60 = vld [vmem:[%s3078_s4 + $0xd0] sm:$0xff] }
  0x55   :  { %2021 = vmatpush3.bf16.msra.mxu1 %v2020_v29  ;;  %1991 = vmatprep.subr.bf16.mxu0 %v1990_v30  ;;  %v370_v56 = vld [vmem:[%s3078_s4 + $0x48] sm:$0xff]  ;;  %v401_v57 = vld [vmem:[%s3078_s4 + $0x140] sm:$0xff]  ;;  %v2030_v58 = vpack.c.bf16 %v418_v51, %v417_v50  ;;  %v388_v61 = vld [vmem:[%s3078_s4 + $0xd8] sm:$0xff]  ;;  %v197_v37 = vsub.s32 0, %v196_v36  ;;  %v205_v39 = vsub.s32 2, %v196_v36 }
  0x56   :  { %2023 = vmatprep.subr.bf16.mxu1 %v2022_v34  ;;  %v402_v59 = vld [vmem:[%s3078_s4 + $0x148] sm:$0xff]  ;;  %v419_v62 = vld [vmem:[%s3078_s4 + $0x1d0] sm:$0xff]  ;;  %v420_v63 = vld [vmem:[%s3078_s4 + $0x1d8] sm:$0xff]  ;;  %v2000_v0 = vpack.c.bf16 %v370_v56, %v369_v55  ;;  %v2002_v2 = vpack.c.bf16 %v388_v61, %v387_v60  ;;  %v2158_v34 = vmov 0.0|0.0  }
  0x57   :  { %v2032_v1 = vpack.c.bf16 %v402_v59, %v401_v57  ;;  %v371_v3 = vld [vmem:[%s3078_s4 + $0x50] sm:$0xff]  ;;  %v372_v4 = vld [vmem:[%s3078_s4 + $0x58] sm:$0xff]  ;;  %v2034_v6 = vpack.c.bf16 %v420_v63, %v419_v62  ;;  %v389_v8 = vld [vmem:[%s3078_s4 + $0xe0] sm:$0xff] }
  0x58   :  { %1993 = vmatpush3.bf16.msra.mxu0 %v1992_v40  ;;  %v403_v5 = vld [vmem:[%s3078_s4 + $0x150] sm:$0xff]  ;;  %v404_v7 = vld [vmem:[%s3078_s4 + $0x158] sm:$0xff]  ;;  %v390_v9 = vld [vmem:[%s3078_s4 + $0xe8] sm:$0xff]  ;;  %v2004_v12 = vpack.c.bf16 %v372_v4, %v371_v3  ;;  %v201_v40 = vsub.s32 1, %v196_v36 }
  0x59   :  { %2025 = vmatpush3.bf16.msra.mxu1 %v2024_v41  ;;  %1995 = vmatprep.subr.bf16.mxu0 %v1994_v42  ;;  %v421_v10 = vld [vmem:[%s3078_s4 + $0x1e0] sm:$0xff]  ;;  %v422_v11 = vld [vmem:[%s3078_s4 + $0x1e8] sm:$0xff]  ;;  %v2036_v13 = vpack.c.bf16 %v404_v7, %v403_v5  ;;  %v2006_v14 = vpack.c.bf16 %v390_v9, %v389_v8  ;;  %v391_v22 = vld [vmem:[%s3078_s4 + $0xf0] sm:$0xff]  ;;  %v209_v41 = vsub.s32 3, %v196_v36 }
  0x5a   :  { %2027 = vmatprep.subr.bf16.mxu1 %v2026_v46  ;;  %v2038_v15 = vpack.c.bf16 %v422_v11, %v421_v10  ;;  %v373_v16 = vld [vmem:[%s3078_s4 + $0x60] sm:$0xff]  ;;  %v374_v17 = vld [vmem:[%s3078_s4 + $0x68] sm:$0xff]  ;;  %v392_v23 = vld [vmem:[%s3078_s4 + $0xf8] sm:$0xff] }
  0x5b   :  { %v405_v18 = vld [vmem:[%s3078_s4 + $0x160] sm:$0xff]  ;;  %v2008_v19 = vpack.c.bf16 %v374_v17, %v373_v16  ;;  %v406_v20 = vld [vmem:[%s3078_s4 + $0x168] sm:$0xff]  ;;  %v423_v24 = vld [vmem:[%s3078_s4 + $0x1f0] sm:$0xff]  ;;  %v2010_v25 = vpack.c.bf16 %v392_v23, %v391_v22 }
  0x5c   :  { %1997 = vmatpush3.bf16.msra.mxu0 %v1996_v52  ;;  %v2040_v21 = vpack.c.bf16 %v406_v20, %v405_v18  ;;  %v424_v26 = vld [vmem:[%s3078_s4 + $0x1f8] sm:$0xff]  ;;  %v375_v27 = vld [vmem:[%s3078_s4 + $0x70] sm:$0xff]  ;;  %v193_v38 = vld [vmem:[%s3102_s26] sm:$0xf]  ;;  %v2160_v18 = vmov 0.0  }
  0x5d   :  { %2029 = vmatpush3.bf16.msra.mxu1 %v2028_v53  ;;  %1999 = vmatprep.subr.bf16.mxu0 %v1998_v54  ;;  %v376_v28 = vld [vmem:[%s3078_s4 + $0x78] sm:$0xff]  ;;  %v2042_v29 = vpack.c.bf16 %v424_v26, %v423_v24  ;;  %v407_v31 = vld [vmem:[%s3078_s4 + $0x170] sm:$0xff]  ;;  %v198_v42 = vrot.slane %v193_v38, %v197_v37  ;;  %v206_v43 = vrot.slane %v193_v38, %v205_v39  ;;  %v573_v50 = vld [vmem:[%s3080_s6] sm:$0xff] }
  0x5e   :  { %2031 = vmatprep.subr.bf16.mxu1 %v2030_v58  ;;  %v2012_v30 = vpack.c.bf16 %v376_v28, %v375_v27  ;;  %v408_v32 = vld [vmem:[%s3078_s4 + $0x178] sm:$0xff]  ;;  %v202_v44 = vrot.slane %v193_v38, %v201_v40  ;;  %v210_v45 = vrot.slane %v193_v38, %v209_v41  ;;  %v574_v51 = vld [vmem:[%s3080_s6 + $0x8] sm:$0xff]  ;;  %v575_v61 = vld [vmem:[%s3080_s6 + $0x10] sm:$0xff]  ;;  %s2161_s4 = smov 112  }
  0x5f   :  { %v2044_v33 = vpack.c.bf16 %v408_v32, %v407_v31  ;;  %v2047_v58 = vpack.c.bf16 %v574_v51, %v573_v50  ;;  %v576_v62 = vld [vmem:[%s3080_s6 + $0x18] sm:$0xff]  ;;  %v579_v3 = vld [vmem:[%s3080_s6 + $0x30] sm:$0xff]  ;;  %v582_v7 = vld [vmem:[%s3080_s6 + $0x48] sm:$0xff] }
  0x60   :  { %2001 = vmatpush3.bf16.msra.mxu0 %v2000_v0  ;;  %v2050_v63 = vpack.c.bf16 %v576_v62, %v575_v61  ;;  %v577_v0 = vld [vmem:[%s3080_s6 + $0x20] sm:$0xff]  ;;  %v580_v4 = vld [vmem:[%s3080_s6 + $0x38] sm:$0xff]  ;;  %v583_v9 = vld [vmem:[%s3080_s6 + $0x50] sm:$0xff] }
  0x61   :  { %2033 = vmatpush3.bf16.msra.mxu1 %v2032_v1  ;;  %2003 = vmatprep.subr.bf16.mxu0 %v2002_v2  ;;  %v578_v1 = vld [vmem:[%s3080_s6 + $0x28] sm:$0xff]  ;;  %v2056_v5 = vpack.c.bf16 %v580_v4, %v579_v3  ;;  %v584_v10 = vld [vmem:[%s3080_s6 + $0x58] sm:$0xff]  ;;  %v1603_v24 = vld [vmem:[%s3079_s5] ss:$0 sm:$0xff] }
  0x62   :  { %2035 = vmatprep.subr.bf16.mxu1 %v2034_v6  ;;  %v2053_v2 = vpack.c.bf16 %v578_v1, %v577_v0  ;;  %v581_v6 = vld [vmem:[%s3080_s6 + $0x40] sm:$0xff]  ;;  %v2062_v11 = vpack.c.bf16 %v584_v10, %v583_v9  ;;  %v588_v16 = vld [vmem:[%s3080_s6 + $0x78] sm:$0xff]  ;;  %v668_v20 = vld [vmem:[%s3082_s8 + $0x8] sm:$0xff] }
  0x63   :  { %v2059_v8 = vpack.c.bf16 %v582_v7, %v581_v6  ;;  %v669_v32 = vld [vmem:[%s3082_s8 + $0x10] sm:$0xff]  ;;  %v1604_v36 = vld [vmem:[%s3081_s7] ss:$0 sm:$0xff] }
  0x64   :  { %2005 = vmatpush3.bf16.msra.mxu0 %v2004_v12  ;;  %v585_v12 = vld [vmem:[%s3080_s6 + $0x60] sm:$0xff] }
  0x65   :  { %2037 = vmatpush3.bf16.msra.mxu1 %v2036_v13  ;;  %2007 = vmatprep.subr.bf16.mxu0 %v2006_v14  ;;  %v586_v13 = vld [vmem:[%s3080_s6 + $0x68] sm:$0xff]  ;;  %v1605_v41 = vld [vmem:[%s3083_s9] ss:$0 sm:$0xff] }
  0x66   :  { %2039 = vmatprep.subr.bf16.mxu1 %v2038_v15  ;;  %v2065_v14 = vpack.c.bf16 %v586_v13, %v585_v12  ;;  %v587_v15 = vld [vmem:[%s3080_s6 + $0x70] sm:$0xff]  ;;  %v1608_v51 = vld [vmem:[%s3086_s12] ss:$0 sm:$0xff]  ;;  %s2162_s12 = smov 8  }
  0x67   :  { %v2068_v17 = vpack.c.bf16 %v588_v16, %v587_v15 }
  0x68   :  { %2009 = vmatpush3.bf16.msra.mxu0 %v2008_v19  ;;  %v667_v19 = vld [vmem:[%s3082_s8] sm:$0xff] }
  0x69   :  { %2041 = vmatpush3.bf16.msra.mxu1 %v2040_v21  ;;  %2011 = vmatprep.subr.bf16.mxu0 %v2010_v25  ;;  %v2071_v21 = vpack.c.bf16 %v668_v20, %v667_v19 }
  0x6a   :  { %2043 = vmatprep.subr.bf16.mxu1 %v2042_v29 }
  0x6c   :  { %2013 = vmatpush3.bf16.msra.mxu0 %v2012_v30 }
  0x6d   :  { %2045 = vmatpush3.bf16.msra.mxu1 %v2044_v33  ;;  %2046 = vmatprep.subr.bf16.mxu0 %v2158_v34  ;;  %v670_v33 = vld [vmem:[%s3082_s8 + $0x18] sm:$0xff] }
  0x6e   :  { %2070 = vmatprep.subr.bf16.mxu1 %v2158_v34  ;;  %v2074_v35 = vpack.c.bf16 %v670_v33, %v669_v32 }
 0x122   :  { %v281_v46 = vpop.f32.mrb[0].mxu0 }
 0x123   :  { %v282_v47 = vadd.f32 %v281_v46, %v198_v42  ;;  %v352_v48 = vpop.f32.mrb[0].mxu1  ;;  %v283_v49 = vpop.f32.mrb[1].mxu0  ;;  %v753_v46 = vld [vmem:[%s3103_s24] sm:$0xff] }
 0x124   :  { %v353_v52 = vadd.f32 %v352_v48, %v206_v43  ;;  %v284_v53 = vadd.f32 %v283_v49, %v202_v44  ;;  %v354_v54 = vpop.f32.mrb[1].mxu1  ;;  %v2955_v48 = vld [vmem:[%s3085_s11] sm:$0xff] }
 0x125   :  { %v355_v55 = vadd.f32 %v354_v54, %v210_v45  ;;  %v357_v59 = vmax.f32 %v282_v47, 0.0  ;;  %v828_v47 = vld [vmem:[%s3084_s10] sm:$0xff] }
 0x126   :  { %v359_v56 = vmax.f32 %v353_v52, 0.0  ;;  %v358_v57 = vmax.f32 %v284_v53, 0.0 }
 0x127   :  { %v360_v60 = vmax.f32 %v355_v55, 0.0 }
 0x128   :  { %496 = vmatprep.mubr.f32.mxu0 %v358_v57 }
 0x129   :  { %566 = vmatprep.mubr.f32.mxu1 %v360_v60  ;;  %497 = vmatmul.mubr.f32.vlgmr.msra.gmra.mrb[2].mxu0 %v357_v59 }
 0x12a   :  { %567 = vmatmul.mubr.f32.vlgmr.msra.gmra.mrb[2].mxu1 %v359_v56  ;;  %2048 = vmatpush3.bf16.msra.mxu0 %v2047_v58 }
 0x12b   :  { %2049 = vmatprep.subr.bf16.mxu0 %v2158_v34  ;;  %1775 = vmatprep.mubr.msk.f32.mxu0 %vm2159_vm0, %v2160_v18 }
 0x12c   :  { %1786 = vmatprep.mubr.msk.f32.mxu1 %vm2159_vm0, %v2160_v18  ;;  %2072 = vmatpush3.bf16.msra.mxu1 %v2071_v21 }
 0x12d   :  { %2073 = vmatprep.subr.bf16.mxu1 %v2158_v34 }
 0x12e   :  { %2051 = vmatpush3.bf16.msra.mxu0 %v2050_v63 }
 0x12f   :  { %2052 = vmatprep.subr.bf16.mxu0 %v2158_v34 }
 0x130   :  { %2075 = vmatpush3.bf16.msra.mxu1 %v2074_v35 }
 0x131   :  { %1789 = vmatprep.subr.mxu1 %v2160_v18 }
 0x132   :  { %2054 = vmatpush3.bf16.msra.mxu0 %v2053_v2 }
 0x133   :  { %2055 = vmatprep.subr.bf16.mxu0 %v2158_v34 }
 0x136   :  { %2057 = vmatpush3.bf16.msra.mxu0 %v2056_v5 }
 0x137   :  { %2058 = vmatprep.subr.bf16.mxu0 %v2158_v34 }
 0x13a   :  { %2060 = vmatpush3.bf16.msra.mxu0 %v2059_v8 }
 0x13b   :  { %2061 = vmatprep.subr.bf16.mxu0 %v2158_v34 }
 0x13e   :  { %2063 = vmatpush3.bf16.msra.mxu0 %v2062_v11 }
 0x13f   :  { %2064 = vmatprep.subr.bf16.mxu0 %v2158_v34 }
 0x142   :  { %2066 = vmatpush3.bf16.msra.mxu0 %v2065_v14 }
 0x143   :  { %2067 = vmatprep.subr.bf16.mxu0 %v2158_v34 }
 0x146   :  { %2069 = vmatpush3.bf16.msra.mxu0 %v2068_v17 }
 0x147   :  { %1819 = vmatprep.subr.mxu0 %v2160_v18 }
 0x1fc   :  { %v1655_v22 = vpop.f32.mrb[2].mxu0 }
 0x1fd   :  { %v1690_v23 = vpop.f32.mrb[2].mxu1  ;;  %v1656_v25 = vpop.f32.mrb[3].mxu0 }
 0x1fe   :  { %v1657_v26 = vadd.f32 %v1656_v25, %v1655_v22  ;;  %v1691_v27 = vpop.f32.mrb[3].mxu1 }
 0x1ff   :  { %v1692_v28 = vadd.f32 %v1691_v27, %v1690_v23 }
 0x200   :  { %v499_v29 = vadd.f32 %v1657_v26, %v1603_v24 }
 0x202   :  { %v569_v30 = vadd.f32 %v1692_v28, %v499_v29 }
 0x204   :  { %v572_v31 = vmax.f32 %v569_v30, 0.0 }
 0x206   :  { %1776 = vmatmul.mubr.f32.vlgmr.msra.gmra.mrb[4].mxu0 %v572_v31 }
 0x207   :  { %1821 = vmatprep.mubr.msk.f32.mxu0 %vm2159_vm0, %v2160_v18 }
 0x2d9   :  { %v662_v37 = vpop.f32.mrb[4].mxu0 }
 0x2da   :  { %v663_v38 = vadd.f32 %v1604_v36, %v662_v37  ;;  %v1777_v39 = vpop.f32.mrb[5].mxu0 }
 0x2dc   :  { %v666_v40 = vmax.f32 %v663_v38, 0.0 }
 0x2de   :  { %1787 = vmatmul.mubr.msk.f32.vlgmr.msra.gmra.mrb[4].mxu1 %vm678_vm1, %v666_v40 }
 0x2df   :  { %1791 = vmatprep.mubr.msk.f32.mxu1 %vm2159_vm0, %v2160_v18 }
 0x3b1   :  { %v748_v42 = vpop.f32.mrb[4].mxu1 }
 0x3b2   :  { %v749_v43 = vadd.f32 %v1605_v41, %v748_v42  ;;  %v1788_v44 = vpop.f32.mrb[5].mxu1 }
 0x3b4   :  { %v752_v45 = vmax.f32 %v749_v43, 0.0 }
 0x3b6   :  { %1790 = vmatpush3.msra.mxu1 %v752_v45 }
 0x3b7   :  { %1792 = vmatmul.mubr.msk.f32.vlgmr.msra.gmra.mrb[6].mxu1 %vm754_vm2, %v753_v46  ;;  %1794 = vmatprep.subr.mxu1 %v2160_v18 }
 0x3b8   :  { %1796 = vmatprep.mubr.msk.f32.mxu1 %vm2159_vm0, %v2160_v18  ;;  %1795 = vmatpush3.msra.mxu1 %v828_v47 }
 0x3b9   :  { %1799 = vmatprep.subr.mxu1 %v2160_v18 }
 0x48a   :  { %v824_v49 = vpop.f32.mrb[6].mxu1 }
 0x48b   :  { %1797 = vmatmul.mubr.msk.f32.vlgmr.msra.gmra.mrb[8].mxu1 %vm754_vm2, %v824_v49  ;;  %v1793_v50 = vpop.f32.mrb[7].mxu1 }
 0x48c   :  { %1800 = vmatpush3.msra.mxu1 %v2955_v48  ;;  %1801 = vmatprep.mubr.msk.f32.mxu1 %vm2159_vm0, %v2160_v18 }
 0x48d   :  { %1804 = vmatprep.subr.mxu1 %v2160_v18 }
 0x48f   :  { %1802 = vmatmul.mubr.f32.vlgmr.msra.gmra.mrb[10].mxu1 %v2160_v18 }
 0x490   :  { %1805 = vmatpush3.msra.mxu1 %v2955_v48  ;;  %1806 = vmatprep.mubr.msk.f32.mxu1 %vm2159_vm0, %v2160_v18 }
 0x491   :  { %1809 = vmatprep.subr.mxu1 %v2160_v18 }
 0x55e   :  { %v905_v52 = vpop.f32.mrb[8].mxu1 }
 0x55f   :  { %v1798_v53 = vpop.f32.mrb[9].mxu1  ;;  %v2970_v54 = vadd.f32 %v1608_v51, %v905_v52 }
 0x562   :  { %v979_v55 = vpop.f32.mrb[10].mxu1 }
 0x563   :  { %v983_v56 = vadd.f32 %v979_v55, %v2970_v54  ;;  %v1803_v57 = vpop.f32.mrb[11].mxu1 }
 0x565   :  { %2102 = vtanh.f32 %v983_v56  ;;  %v1610_v59 = vmul.f32 -1.442695, %v983_v56 }
 0x567   :  { %2104 = vpow2.f32 %v1610_v59 }
 0x56f   :  { %v2103_v58 = vpop.eup %2102 }
 0x570   :  { %993 = vrot.lane.b32.xlu0 %v2103_v58, %s2161_s4 }
 0x571   :  { %v2105_v60 = vpop.eup %2104 }
 0x572   :  { %v987_v61 = vadd.f32 1.0, %v2105_v60 }
 0x574   :  { %2106 = vrcp.f32 %v987_v61 }
 0x57e   :  { %v2107_v62 = vpop.eup %2106 }
 0x57f   :  { %v991_v1 = vmul.f32 0.0, %v2107_v62 }
 0x5e2   :  { %v994_v63 = vpop.permute.xlu0 %993 }
 0x5e3   :  { %v996_v0 = vmul.f32 %v2107_v62, %v994_v63 }
 0x5e5   :  { %998 = vrot.lane.b32.xlu0 %v996_v0, %s2162_s12 }
 0x657   :  { %v999_v2 = vpop.permute.xlu0 %998 }
 0x658   :  { %v1001_v3 = vadd.f32 %v999_v2, %v991_v1 }
 0x65a   :  { %2108 = vtanh.f32 %v1001_v3  ;;  %v1095_v20 = vrot.slane %v1001_v3, 6  ;;  %v1413_v3 = vld [vmem:[%s3089_s15] sm:$0xff] }
 0x664   :  { %v2109_v4 = vpop.eup %2108 }
 0x665   :  { %1004 = vrot.lane.b32.xlu1 %v2109_v4, %s2163_s27  ;;  %v1414_v4 = vld [vmem:[%s3089_s15 + $0x8] sm:$0xff] }
 0x6d7   :  { %v1005_v5 = vpop.permute.xlu1 %1004 }
 0x6d8   :  { %v1007_v6 = vmul.f32 %v2107_v62, %v1005_v5  ;;  %v1415_v5 = vld [vmem:[%s3089_s15 + $0x10] sm:$0xff] }
 0x6da   :  { %1009 = vrot.lane.b32.xlu1 %v1007_v6, %s2164_s28  ;;  %v2077_v6 = vpack.c.bf16 %v1414_v4, %v1413_v3 }
 0x74c   :  { %v1010_v7 = vpop.permute.xlu1 %1009 }
 0x74d   :  { %1807 = vmatmul.mubr.msk.f32.vlgmr.msra.gmra.mrb[12].mxu1 %vm754_vm2, %v1010_v7  ;;  %v1416_v7 = vld [vmem:[%s3089_s15 + $0x18] sm:$0xff] }
 0x74e   :  { %1810 = vmatpush3.msra.mxu1 %v2955_v48  ;;  %1811 = vmatprep.mubr.msk.f32.mxu1 %vm2159_vm0, %v2160_v18 }
 0x74f   :  { %1814 = vmatprep.subr.mxu1 %v2160_v18 }
 0x820   :  { %v1079_v8 = vpop.f32.mrb[12].mxu1 }
 0x821   :  { %v1084_v9 = vrot.slane %v1079_v8, 6  ;;  %v1808_v10 = vpop.f32.mrb[13].mxu1  ;;  %v2080_v8 = vpack.c.bf16 %v1416_v7, %v1415_v5 }
 0x822   :  { %v1418_v10 = vld [vmem:[%s3089_s15 + $0x28] sm:$0xff] }
 0x823   :  { %v1086_v11 = vadd.f32 %v1084_v9, %v2970_v54  ;;  %v1417_v9 = vld [vmem:[%s3089_s15 + $0x20] sm:$0xff] }
 0x825   :  { %2110 = vtanh.f32 %v1086_v11  ;;  %v1612_v13 = vmul.f32 -1.442695, %v1086_v11  ;;  %v2083_v11 = vpack.c.bf16 %v1418_v10, %v1417_v9 }
 0x827   :  { %2112 = vpow2.f32 %v1612_v13 }
 0x82f   :  { %v2111_v12 = vpop.eup %2110 }
 0x830   :  { %1099 = vrot.lane.b32.xlu0 %v2111_v12, %s2161_s4 }
 0x831   :  { %v2113_v14 = vpop.eup %2112 }
 0x832   :  { %v1090_v15 = vadd.f32 1.0, %v2113_v14 }
 0x834   :  { %2114 = vrcp.f32 %v1090_v15 }
 0x83e   :  { %v2115_v16 = vpop.eup %2114 }
 0x83f   :  { %v1097_v21 = vmul.f32 %v2115_v16, %v1095_v20  ;;  %v1503_v20 = vld [vmem:[%s3091_s17] sm:$0xff] }
 0x8a2   :  { %v1100_v17 = vpop.permute.xlu0 %1099 }
 0x8a3   :  { %v1102_v19 = vmul.f32 %v2115_v16, %v1100_v17  ;;  %v1420_v17 = vld [vmem:[%s3089_s15 + $0x38] sm:$0xff] }
 0x8a5   :  { %1104 = vrot.lane.b32.xlu1 %v1102_v19, %s2162_s12 }
 0x917   :  { %v1105_v22 = vpop.permute.xlu1 %1104 }
 0x918   :  { %v1107_v23 = vadd.f32 %v1105_v22, %v1097_v21  ;;  %v1504_v21 = vld [vmem:[%s3091_s17 + $0x8] sm:$0xff] }
 0x919   :  { %v2089_v22 = vpack.c.bf16 %v1504_v21, %v1503_v20 }
 0x91a   :  { %2116 = vtanh.f32 %v1107_v23  ;;  %v1202_v41 = vrot.slane %v1107_v23, 6 }
 0x924   :  { %v2117_v24 = vpop.eup %2116 }
 0x925   :  { %1110 = vrot.lane.b32.xlu0 %v2117_v24, %s2163_s27 }
 0x997   :  { %v1111_v25 = vpop.permute.xlu0 %1110 }
 0x998   :  { %v1113_v26 = vmul.f32 %v2115_v16, %v1111_v25  ;;  %v1419_v16 = vld [vmem:[%s3089_s15 + $0x30] sm:$0xff] }
 0x999   :  { %v2086_v19 = vpack.c.bf16 %v1420_v17, %v1419_v16 }
 0x99a   :  { %v1115_v27 = vrot.slane %v1113_v26, 2 }
 0x99c   :  { %1116 = vrot.lane.b32.xlu1 %v1115_v27, %s2164_s28  ;;  %v1505_v27 = vld [vmem:[%s3091_s17 + $0x10] sm:$0xff] }
 0xa0e   :  { %v1117_v28 = vpop.permute.xlu1 %1116 }
 0xa0f   :  { %1812 = vmatmul.mubr.msk.f32.vlgmr.msra.gmra.mrb[14].mxu1 %vm754_vm2, %v1117_v28  ;;  %v1506_v28 = vld [vmem:[%s3091_s17 + $0x18] sm:$0xff]  ;;  %s2134_s17 = scalar_lea.vmem %s1596_s22, 32 }
 0xa10   :  { %1815 = vmatpush3.msra.mxu1 %v2955_v48  ;;  %1816 = vmatprep.mubr.msk.f32.mxu1 %vm2159_vm0, %v2160_v18  ;;  %p2135_p0 = scmp.ne.s32.totalorder %s1596_s22, %s2134_s17  ;;  %p2140_p2 = scmp.lt.s32.totalorder %s2134_s17, %s2134_s17 }
 0xa11   :  { %2076 = vmatprep.subr.bf16.mxu1 %v2158_v34 }
 0xa12   :  { %p2141_p3 = por %p2140_p2, %p2139_p1 }
 0xa14   :  { %p2142_p4 = pnand %p2141_p3, %p2135_p0 }
 0xae2   :  { %v1186_v29 = vpop.f32.mrb[14].mxu1 }
 0xae3   :  { %v1191_v30 = vrot.slane %v1186_v29, 4  ;;  %v1813_v31 = vpop.f32.mrb[15].mxu1  ;;  %v2092_v29 = vpack.c.bf16 %v1506_v28, %v1505_v27 }
 0xae5   :  { %v1193_v32 = vadd.f32 %v1191_v30, %v2970_v54 }
 0xae7   :  { %2118 = vtanh.f32 %v1193_v32  ;;  %v1614_v35 = vmul.f32 -1.442695, %v1193_v32 }
 0xae9   :  { %2120 = vpow2.f32 %v1614_v35  ;;  %v1621_v35 = vld [vmem:[%s3092_s18] ss:$0 sm:$0xff] }
 0xaf1   :  { %v2119_v33 = vpop.eup %2118 }
 0xaf2   :  { %1206 = vrot.lane.b32.xlu0 %v2119_v33, %s2161_s4 }
 0xaf3   :  { %v2121_v36 = vpop.eup %2120 }
 0xaf4   :  { %v1197_v37 = vadd.f32 1.0, %v2121_v36 }
 0xaf6   :  { %2122 = vrcp.f32 %v1197_v37 }
 0xb00   :  { %v2123_v38 = vpop.eup %2122 }
 0xb01   :  { %v1204_v42 = vmul.f32 %v2123_v38, %v1202_v41 }
 0xb64   :  { %v1207_v39 = vpop.permute.xlu0 %1206 }
 0xb65   :  { %v1209_v40 = vmul.f32 %v2123_v38, %v1207_v39 }
 0xb67   :  { %1211 = vrot.lane.b32.xlu1 %v1209_v40, %s2162_s12 }
 0xbd9   :  { %v1212_v43 = vpop.permute.xlu1 %1211 }
 0xbda   :  { %v1214_v44 = vadd.f32 %v1212_v43, %v1204_v42 }
 0xbdc   :  { %2124 = vtanh.f32 %v1214_v44  ;;  %v1309_v62 = vrot.slane %v1214_v44, 6 }
 0xbe6   :  { %v2125_v45 = vpop.eup %2124 }
 0xbe7   :  { %1217 = vrot.lane.b32.xlu0 %v2125_v45, %s2163_s27 }
 0xc59   :  { %v1218_v46 = vpop.permute.xlu0 %1217 }
 0xc5a   :  { %v1220_v47 = vmul.f32 %v2123_v38, %v1218_v46 }
 0xc5c   :  { %v1222_v48 = vrot.slane %v1220_v47, 4 }
 0xc5e   :  { %1223 = vrot.lane.b32.xlu1 %v1222_v48, %s2164_s28 }
 0xcd0   :  { %v1224_v49 = vpop.permute.xlu1 %1223 }
 0xcd1   :  { %1817 = vmatmul.mubr.msk.f32.vlgmr.msra.gmra.mrb[16].mxu1 %vm754_vm2, %v1224_v49 }
 0xcd2   :  { %1840 = vmatprep.mubr.msk.f32.mxu1 %vm2159_vm0, %v2160_v18  ;;  %2078 = vmatpush3.bf16.msra.mxu1 %v2077_v6 }
 0xcd3   :  { %2079 = vmatprep.subr.bf16.mxu1 %v2158_v34 }
 0xcd6   :  { %2081 = vmatpush3.bf16.msra.mxu1 %v2080_v8 }
 0xcd7   :  { %2082 = vmatprep.subr.bf16.mxu1 %v2158_v34 }
 0xcda   :  { %2084 = vmatpush3.bf16.msra.mxu1 %v2083_v11 }
 0xcdb   :  { %2085 = vmatprep.subr.bf16.mxu1 %v2158_v34 }
 0xcde   :  { %2087 = vmatpush3.bf16.msra.mxu1 %v2086_v19 }
 0xda4   :  { %v1293_v50 = vpop.f32.mrb[16].mxu1 }
 0xda5   :  { %v1298_v51 = vrot.slane %v1293_v50, 2  ;;  %v1818_v52 = vpop.f32.mrb[17].mxu1 }
 0xda7   :  { %v1300_v53 = vadd.f32 %v1298_v51, %v2970_v54  ;;  %v1328_v54 = vld [vmem:[%s3087_s13] sm:$0xff] }
 0xda8   :  { %1820 = vmatpush3.msra.mxu0 %v1328_v54 }
 0xda9   :  { %2126 = vtanh.f32 %v1300_v53  ;;  %v1616_v56 = vmul.f32 -1.442695, %v1300_v53  ;;  %2088 = vmatprep.subr.bf16.mxu0 %v2158_v34 }
 0xdab   :  { %2128 = vpow2.f32 %v1616_v56 }
 0xdb3   :  { %v2127_v55 = vpop.eup %2126 }
 0xdb4   :  { %1313 = vrot.lane.b32.xlu0 %v2127_v55, %s2161_s4 }
 0xdb5   :  { %v2129_v57 = vpop.eup %2128 }
 0xdb6   :  { %v1304_v58 = vadd.f32 1.0, %v2129_v57 }
 0xdb8   :  { %2130 = vrcp.f32 %v1304_v58 }
 0xdc2   :  { %v2131_v59 = vpop.eup %2130 }
 0xdc3   :  { %v1311_v63 = vmul.f32 %v2131_v59, %v1309_v62 }
 0xe26   :  { %v1314_v60 = vpop.permute.xlu0 %1313 }
 0xe27   :  { %v1316_v61 = vmul.f32 %v2131_v59, %v1314_v60 }
 0xe29   :  { %1318 = vrot.lane.b32.xlu1 %v1316_v61, %s2162_s12 }
 0xe9b   :  { %v1319_v0 = vpop.permute.xlu1 %1318 }
 0xe9c   :  { %v1321_v1 = vadd.f32 %v1319_v0, %v1311_v63 }
 0xe9e   :  { %2132 = vtanh.f32 %v1321_v1 }
 0xea8   :  { %v2133_v2 = vpop.eup %2132 }
 0xea9   :  { %1324 = vrot.lane.b32.xlu0 %v2133_v2, %s2163_s27 }
 0xf1b   :  { %v1325_v12 = vpop.permute.xlu0 %1324 }
 0xf1c   :  { %v1327_v13 = vmul.f32 %v2131_v59, %v1325_v12 }
 0xf1e   :  { %v1337_v14 = vrot.slane %v1327_v13, 6 }
 0xf20   :  { %1338 = vrot.lane.b32.xlu1 %v1337_v14, %s2164_s28 }
 0xf92   :  { %v1339_v15 = vpop.permute.xlu1 %1338 }
 0xf93   :  { %1822 = vmatmul.mubr.msk.f32.vlgmr.msra.gmra.mrb[6].mxu0 %vm754_vm2, %v1339_v15 }
 0xf94   :  { %1851 = vmatprep.mubr.msk.f32.mxu0 %vm2159_vm0, %v2160_v18  ;;  %2090 = vmatpush3.bf16.msra.mxu0 %v2089_v22  ;;  %v1617_v18 = vld [vmem:[%s3088_s14] ss:$0 sm:$0xff] }
 0xf95   :  { %2091 = vmatprep.subr.bf16.mxu0 %v2158_v34  ;;  %v1619_v34 = vld [vmem:[%s3090_s16] ss:$0 sm:$0xff] }
 0xf98   :  { %2093 = vmatpush3.bf16.msra.mxu0 %v2092_v29 }
0x1066   :  { %v1408_v23 = vpop.f32.mrb[6].mxu0 }
0x1067   :  { %v1409_v24 = vadd.f32 %v1617_v18, %v1408_v23  ;;  %v1823_v25 = vpop.f32.mrb[7].mxu0 }
0x1069   :  { %v1412_v26 = vmax.f32 %v1409_v24, 0.0 }
0x106b   :  { %1841 = vmatmul.mubr.msk.f32.vlgmr.msra.gmra.mrb[18].mxu1 %vm1428_vm3, %v1412_v26 }
0x113e   :  { %v1498_v30 = vpop.f32.mrb[18].mxu1 }
0x113f   :  { %v1499_v31 = vadd.f32 %v1619_v34, %v1498_v30  ;;  %v1842_v32 = vpop.f32.mrb[19].mxu1 }
0x1141   :  { %v1502_v33 = vmax.f32 %v1499_v31, 0.0 }
0x1143   :  { %1852 = vmatmul.mubr.msk.f32.vlgmr.msra.gmra.mrb[8].mxu0 %vm678_vm1, %v1502_v33 }
0x1216   :  { %v1583_v36 = vpop.f32.mrb[8].mxu0 }
0x1217   :  { %v1584_v37 = vadd.f32 %v1621_v35, %v1583_v36  ;;  %v1853_v38 = vpop.f32.mrb[9].mxu0 }
0x1219   :  { %1588 = vst.msk [vmem:[#allocation2] sm:$0x3] %vm1587_vm4, %v1584_v37 }
0x121a   :  { %2145 = shalt.err (!%p2142_p4)
}
0x121b   :  { %s2146_s13 = scalar_lea.hbm %s3093_s19, 32 }
0x121c   :  { %p2147_p5 = scmp.ne.s32.totalorder %s3093_s19, %s2146_s13  ;;  %p2150_p6 = scmp.lt.u32.totalorder %s2146_s13, %s3093_s19 }
0x121e   :  { %p2152_p7 = pnand %p2150_p6, %p2147_p5 }
0x1220   :  { %2155 = shalt.err (!%p2152_p7)
}
0x1221   :  { %1598 = dma.vmem_to_hbm [thread:$0]  %s1596_s22, 32, %s3093_s19, [#allocation3]  }
0x1222   :  { %2156 = dma.done.wait [#allocation3], 32  }
0x1223   :  { %2157 = vsyncadd [#allocation3], 4294967264 }
0x1224   :  { %1602 = vsyncpa [#allocation3], 1 }

</bundles_post_ra>
